<compile_context>
chip_gen: v6e
topology: v6e:2x2x1
jax: 0.10.0
libtpu: 0.0.40
codegen_flags: <defaults>
</compile_context>

<pallas_src>
import numpy as np
import jax
import jax.numpy as jnp
from jax.experimental import pallas as pl
from jax.experimental.pallas import tpu as pltpu

KSIZE = 7
PAD = 3      # kernel_size=7 -> padding=3


def bilinear_upsample_matrix(n_in: int) -> np.ndarray:
    """(2*n_in, n_in) matrix implementing PyTorch F.interpolate(scale=2,
    mode='bilinear', align_corners=False) along one axis."""
    n_out = 2 * n_in
    U = np.zeros((n_out, n_in), np.float32)
    for i in range(n_out):
        src = (i + 0.5) / 2.0 - 0.5
        src = max(src, 0.0)  # PyTorch clamps negative source coords to 0
        i0 = int(np.floor(src))
        frac = src - i0
        i0c = min(i0, n_in - 1)
        i1c = min(i0 + 1, n_in - 1)
        U[i, i0c] += 1.0 - frac
        U[i, i1c] += frac
    return U


def rgb_guide_sa_kernel(mpad_ref, focal_ref, focal2_ref, w_ref, uh_ref,
                        uwt_ref, out_ref, sa1_ref):
    # mpad_ref:   (1, H+6, W+6)  zero-padded channel-max map (conv zero pad)
    # focal_ref:  (1, Ct, H, W)
    # focal2_ref: (1, Ct, H2, W2)
    # w_ref:      (49,) conv weight in SMEM
    # uh_ref:     (H, H2)   row-upsample matrix   (compute dtype)
    # uwt_ref:    (W2, W)   col-upsample matrix^T (compute dtype)
    # out_ref:    (1, Ct, H, W)
    # sa1_ref:    (H, W) f32 VMEM scratch, persistent across channel blocks
    Ct = focal_ref.shape[1]
    H, W = focal_ref.shape[2], focal_ref.shape[3]
    H2, W2 = focal2_ref.shape[2], focal2_ref.shape[3]

    # --- SpatialAttention, computed once per batch (channel axis is
    # "arbitrary", so the scratch survives across its channel blocks).
    @pl.when(pl.program_id(1) == 0)
    def _():
        mpad = mpad_ref[0].astype(jnp.float32)                    # (H+6, W+6)
        cols = [mpad[:, dx:dx + W] for dx in range(KSIZE)]        # 7 lane slices
        accs = [jnp.zeros((H, W), jnp.float32) for _ in range(4)]
        for dy in range(KSIZE):
            for dx in range(KSIZE):
                i = dy * KSIZE + dx
                accs[i % 4] = accs[i % 4] + w_ref[i] * cols[dx][dy:dy + H, :]
        conv = (accs[0] + accs[1]) + (accs[2] + accs[3])
        # Fold the "+ focal" residual into the map: sa1 = sigmoid(conv) + 1.
        sa1_ref[...] = jax.nn.sigmoid(conv) + 1.0

    # --- 2x bilinear upsample, batched over the channel block. MXU matmuls
    # run in focal2's native dtype (bf16 passthrough) with f32 accumulation.
    f2 = focal2_ref[0]                                            # (Ct, H2, W2)
    cdt = f2.dtype
    t = jnp.dot(f2.reshape(Ct * H2, W2), uwt_ref[...],
                preferred_element_type=jnp.float32)               # (Ct*H2, W) f32
    t = t.reshape(Ct, H2, W).astype(cdt)
    uh_b = jnp.broadcast_to(uh_ref[...], (Ct, H, H2))             # hoisted once
    up = jax.lax.dot_general(uh_b, t, (((2,), (1,)), ((0,), (0,))),
                             preferred_element_type=jnp.float32)  # (Ct, H, W) f32

    # --- fused elementwise over the whole channel slab.
    focal = focal_ref[0].astype(jnp.float32)                      # (Ct, H, W)
    out_ref[0] = (sa1_ref[...][None, :, :] * focal + up).astype(out_ref.dtype)


def _vmem_params():
    """(channel-tile budget, scoped-VMEM cap) — generation aware."""
    cap = 128 << 20
    try:
        cap = int(pltpu.get_tpu_info().vmem_capacity_bytes)
    except Exception:
        pass
    if cap >= (100 << 20):          # 128 MiB parts (v5e / v6e)
        return 56 << 20, 96 << 20
    # 64 MiB parts (v7x): leave headroom for Mosaic internal scratch.
    return 20 << 20, 48 << 20


def rgb_guide_sa(rgb, focal, focal2, conv_w):
    B, Cr, H, W = rgb.shape
    Bf, Cf, Hf, Wf = focal.shape
    _, _, H2, W2 = focal2.shape
    assert (B, H, W) == (Bf, Hf, Wf) and H == 2 * H2 and W == 2 * W2

    # Channel-max map via a tiny XLA op; only this single-channel map gets the
    # conv zero padding. focal / focal2 / out are NOT padded (full-extent
    # last-dim blocks avoid the extra HBM pad/unpad passes).
    m = jnp.max(rgb, axis=1)                                      # (B, H, W)
    mpad = jnp.pad(m, ((0, 0), (PAD, PAD), (PAD, PAD)))           # (B, H+6, W+6)

    cdt = focal2.dtype   # matmul operand dtype (bf16 passthrough)
    uh = jnp.asarray(bilinear_upsample_matrix(H2)).astype(cdt)    # (H, H2)
    uwt = jnp.asarray(bilinear_upsample_matrix(W2).T).astype(cdt)  # (W2, W)
    w = jnp.asarray(conv_w, jnp.float32).reshape(-1)              # (49,) SMEM
    assert w.shape[0] == KSIZE * KSIZE

    isz = jnp.dtype(focal.dtype).itemsize
    csz = jnp.dtype(cdt).itemsize
    msz = jnp.dtype(mpad.dtype).itemsize

    tile_budget, vmem_cap = _vmem_params()

    # Per-grid-step VMEM footprint model (double-buffered I/O + body temps).
    fixed = (2 * (H + 2 * PAD) * (W + 2 * PAD) * msz   # mpad
             + 2 * H * H2 * csz + 2 * W2 * W * csz     # uh, uwt
             + H * W * 4)                              # sa1 scratch
    per_c = (4 * H * W * isz            # focal in + out, double-buffered
             + 2 * H2 * W2 * isz        # focal2 in, double-buffered
             + 4 * H * W * 4            # f32 temporaries (focal, up, product, slack)
             + H2 * W * (4 + csz)       # t (f32 acc) + downcast copy
             + H * H2 * csz)            # uh broadcast for batched dot_general
    Ct = int(max(1, min(Cf, (tile_budget - fixed) // per_c)))
    n_cblk = int(pl.cdiv(Cf, Ct))       # partial last block is clipped by Pallas

    vmem_limit = int(min(vmem_cap,
                         max(32 << 20, fixed + Ct * per_c + (4 << 20))))

    grid = (B, n_cblk)
    in_specs = [
        pl.BlockSpec((1, H + 2 * PAD, W + 2 * PAD), lambda b, c: (b, 0, 0)),
        pl.BlockSpec((1, Ct, H, W), lambda b, c: (b, c, 0, 0)),
        pl.BlockSpec((1, Ct, H2, W2), lambda b, c: (b, c, 0, 0)),
        pl.BlockSpec(memory_space=pltpu.MemorySpace.SMEM),  # (49,) conv weight
        pl.BlockSpec((H, H2), lambda b, c: (0, 0)),
        pl.BlockSpec((W2, W), lambda b, c: (0, 0)),
    ]
    out_specs = pl.BlockSpec((1, Ct, H, W), lambda b, c: (b, c, 0, 0))

    return pl.pallas_call(
        rgb_guide_sa_kernel,
        out_shape=jax.ShapeDtypeStruct((B, Cf, H, W), focal.dtype),
        grid=grid,
        in_specs=in_specs,
        out_specs=out_specs,
        scratch_shapes=[pltpu.VMEM((H, W), jnp.float32)],   # sa1 cache
        compiler_params=pltpu.CompilerParams(
            dimension_semantics=("parallel", "arbitrary"),
            vmem_limit_bytes=vmem_limit),
    )(mpad, focal, focal2, w, uh, uwt)


def reference(rgb, focal, focal2, conv_w):
    """Pure-JAX reference for validation."""
    m = jnp.max(rgb, axis=1, keepdims=True)
    conv = jax.lax.conv_general_dilated(
        m.astype(jnp.float32),
        jnp.asarray(conv_w, jnp.float32).reshape(1, 1, KSIZE, KSIZE),
        window_strides=(1, 1), padding="SAME",
        dimension_numbers=("NCHW", "OIHW", "NCHW"))
    sa = jax.nn.sigmoid(conv)
    H2, W2 = focal2.shape[2], focal2.shape[3]
    uh = jnp.asarray(bilinear_upsample_matrix(H2))
    uw = jnp.asarray(bilinear_upsample_matrix(W2))
    up = jnp.einsum("hH,bcHV,wV->bchw", uh, focal2.astype(jnp.float32), uw)
    return (sa * focal + focal + up).astype(focal.dtype)


if __name__ == "__main__":
    key = jax.random.PRNGKey(0)
    k1, k2, k3, k4 = jax.random.split(key, 4)

    B, Cr, Cf, H, W = 2, 3, 4, 16, 16
    rgb = jax.random.normal(k1, (B, Cr, H, W), jnp.float32)
    focal = jax.random.normal(k2, (B, Cf, H, W), jnp.float32)
    focal2 = jax.random.normal(k3, (B, Cf, H // 2, W // 2), jnp.float32)
    # Deterministic synthetic conv1 weight (PyTorch shape (1,1,7,7) -> (7,7))
    conv_w = jax.random.normal(k4, (KSIZE, KSIZE), jnp.float32) * 0.1

    out = rgb_guide_sa(rgb, focal, focal2, conv_w)
    jax.block_until_ready(out)

    ref = reference(rgb, focal, focal2, conv_w)
    assert out.shape == (B, Cf, H, W)
    err = float(jnp.max(jnp.abs(out - ref)))
    assert jnp.allclose(out, ref, atol=1e-4, rtol=1e-4), f"max abs err = {err}"

    print("KERNEL_OK")
</pallas_src>

<mosaic_0001>
module attributes {stable_mosaic.version = 11 : i64} {
  func.func @rgb_guide_sa_kernel(%arg0: i32, %arg1: i32, %arg2: memref<1x22x22xf32, #tpu.memory_space<vmem>>, %arg3: memref<1x4x16x16xf32, #tpu.memory_space<vmem>>, %arg4: memref<1x4x8x8xf32, #tpu.memory_space<vmem>>, %arg5: memref<49xf32, #tpu.memory_space<smem>>, %arg6: memref<16x8xf32, #tpu.memory_space<vmem>>, %arg7: memref<8x16xf32, #tpu.memory_space<vmem>>, %arg8: memref<1x4x16x16xf32, #tpu.memory_space<vmem>>, %arg9: memref<16x16xf32, #tpu.memory_space<vmem>>) attributes {dimension_semantics = [#tpu.dimension_semantics<parallel>, #tpu.dimension_semantics<arbitrary>], iteration_bounds = array<i64: 2, 1>, scalar_prefetch = 0 : i64, scratch_operands = 1 : i64, tpu.core_type = #tpu.core_type<tc>, window_params = [{transform_indices = @transform_0, window_bounds = array<i64: 1, 22, 22>}, {transform_indices = @transform_1, window_bounds = array<i64: 1, 4, 16, 16>}, {transform_indices = @transform_2, window_bounds = array<i64: 1, 4, 8, 8>}, {transform_indices = @transform_3, window_bounds = array<i64: 49>}, {pipeline_mode = #tpu.pipeline_mode<synchronous>, transform_indices = @transform_4, window_bounds = array<i64: 16, 8>}, {pipeline_mode = #tpu.pipeline_mode<synchronous>, transform_indices = @transform_5, window_bounds = array<i64: 8, 16>}, {transform_indices = @transform_6, window_bounds = array<i64: 1, 4, 16, 16>}]} {
    %c0_i32 = arith.constant 0 : i32
    %0 = arith.cmpi eq, %arg1, %c0_i32 : i32
    %1 = arith.extui %0 : i1 to i32
    %c0_i32_0 = arith.constant 0 : i32
    %2 = arith.cmpi ne, %1, %c0_i32_0 : i32
    scf.if %2 {
      %c0_19 = arith.constant 0 : index
      %c0_20 = arith.constant 0 : index
      %c0_21 = arith.constant 0 : index
      %23 = vector.load %arg2[%c0_19, %c0_20, %c0_21] : memref<1x22x22xf32, #tpu.memory_space<vmem>>, vector<1x22x22xf32>
      %24 = vector.shape_cast %23 : vector<1x22x22xf32> to vector<22x22xf32>
      %25 = vector.extract_strided_slice %24 {offsets = [0, 0], sizes = [22, 16], strides = [1, 1]} : vector<22x22xf32> to vector<22x16xf32>
      %26 = vector.extract_strided_slice %24 {offsets = [0, 1], sizes = [22, 16], strides = [1, 1]} : vector<22x22xf32> to vector<22x16xf32>
      %27 = vector.extract_strided_slice %24 {offsets = [0, 2], sizes = [22, 16], strides = [1, 1]} : vector<22x22xf32> to vector<22x16xf32>
      %28 = vector.extract_strided_slice %24 {offsets = [0, 3], sizes = [22, 16], strides = [1, 1]} : vector<22x22xf32> to vector<22x16xf32>
      %29 = vector.extract_strided_slice %24 {offsets = [0, 4], sizes = [22, 16], strides = [1, 1]} : vector<22x22xf32> to vector<22x16xf32>
      %30 = vector.extract_strided_slice %24 {offsets = [0, 5], sizes = [22, 16], strides = [1, 1]} : vector<22x22xf32> to vector<22x16xf32>
      %31 = vector.extract_strided_slice %24 {offsets = [0, 6], sizes = [22, 16], strides = [1, 1]} : vector<22x22xf32> to vector<22x16xf32>
      %cst_22 = arith.constant 0.000000e+00 : f32
      %32 = vector.broadcast %cst_22 : f32 to vector<16x16xf32>
      %cst_23 = arith.constant 0.000000e+00 : f32
      %33 = vector.broadcast %cst_23 : f32 to vector<16x16xf32>
      %cst_24 = arith.constant 0.000000e+00 : f32
      %34 = vector.broadcast %cst_24 : f32 to vector<16x16xf32>
      %cst_25 = arith.constant 0.000000e+00 : f32
      %35 = vector.broadcast %cst_25 : f32 to vector<16x16xf32>
      %c0_26 = arith.constant 0 : index
      %36 = memref.load %arg5[%c0_26] : memref<49xf32, #tpu.memory_space<smem>>
      %37 = vector.extract_strided_slice %25 {offsets = [0, 0], sizes = [16, 16], strides = [1, 1]} : vector<22x16xf32> to vector<16x16xf32>
      %38 = vector.broadcast %36 : f32 to vector<16x16xf32>
      %39 = arith.mulf %38, %37 : vector<16x16xf32>
      %40 = arith.addf %32, %39 : vector<16x16xf32>
      %c1 = arith.constant 1 : index
      %41 = memref.load %arg5[%c1] : memref<49xf32, #tpu.memory_space<smem>>
      %42 = vector.extract_strided_slice %26 {offsets = [0, 0], sizes = [16, 16], strides = [1, 1]} : vector<22x16xf32> to vector<16x16xf32>
      %43 = vector.broadcast %41 : f32 to vector<16x16xf32>
      %44 = arith.mulf %43, %42 : vector<16x16xf32>
      %45 = arith.addf %33, %44 : vector<16x16xf32>
      %c2 = arith.constant 2 : index
      %46 = memref.load %arg5[%c2] : memref<49xf32, #tpu.memory_space<smem>>
      %47 = vector.extract_strided_slice %27 {offsets = [0, 0], sizes = [16, 16], strides = [1, 1]} : vector<22x16xf32> to vector<16x16xf32>
      %48 = vector.broadcast %46 : f32 to vector<16x16xf32>
      %49 = arith.mulf %48, %47 : vector<16x16xf32>
      %50 = arith.addf %34, %49 : vector<16x16xf32>
      %c3 = arith.constant 3 : index
      %51 = memref.load %arg5[%c3] : memref<49xf32, #tpu.memory_space<smem>>
      %52 = vector.extract_strided_slice %28 {offsets = [0, 0], sizes = [16, 16], strides = [1, 1]} : vector<22x16xf32> to vector<16x16xf32>
      %53 = vector.broadcast %51 : f32 to vector<16x16xf32>
      %54 = arith.mulf %53, %52 : vector<16x16xf32>
      %55 = arith.addf %35, %54 : vector<16x16xf32>
      %c4 = arith.constant 4 : index
      %56 = memref.load %arg5[%c4] : memref<49xf32, #tpu.memory_space<smem>>
      %57 = vector.extract_strided_slice %29 {offsets = [0, 0], sizes = [16, 16], strides = [1, 1]} : vector<22x16xf32> to vector<16x16xf32>
      %58 = vector.broadcast %56 : f32 to vector<16x16xf32>
      %59 = arith.mulf %58, %57 : vector<16x16xf32>
      %60 = arith.addf %40, %59 : vector<16x16xf32>
      %c5 = arith.constant 5 : index
      %61 = memref.load %arg5[%c5] : memref<49xf32, #tpu.memory_space<smem>>
      %62 = vector.extract_strided_slice %30 {offsets = [0, 0], sizes = [16, 16], strides = [1, 1]} : vector<22x16xf32> to vector<16x16xf32>
      %63 = vector.broadcast %61 : f32 to vector<16x16xf32>
      %64 = arith.mulf %63, %62 : vector<16x16xf32>
      %65 = arith.addf %45, %64 : vector<16x16xf32>
      %c6 = arith.constant 6 : index
      %66 = memref.load %arg5[%c6] : memref<49xf32, #tpu.memory_space<smem>>
      %67 = vector.extract_strided_slice %31 {offsets = [0, 0], sizes = [16, 16], strides = [1, 1]} : vector<22x16xf32> to vector<16x16xf32>
      %68 = vector.broadcast %66 : f32 to vector<16x16xf32>
      %69 = arith.mulf %68, %67 : vector<16x16xf32>
      %70 = arith.addf %50, %69 : vector<16x16xf32>
      %c7 = arith.constant 7 : index
      %71 = memref.load %arg5[%c7] : memref<49xf32, #tpu.memory_space<smem>>
      %72 = vector.extract_strided_slice %25 {offsets = [1, 0], sizes = [16, 16], strides = [1, 1]} : vector<22x16xf32> to vector<16x16xf32>
      %73 = vector.broadcast %71 : f32 to vector<16x16xf32>
      %74 = arith.mulf %73, %72 : vector<16x16xf32>
      %75 = arith.addf %55, %74 : vector<16x16xf32>
      %c8 = arith.constant 8 : index
      %76 = memref.load %arg5[%c8] : memref<49xf32, #tpu.memory_space<smem>>
      %77 = vector.extract_strided_slice %26 {offsets = [1, 0], sizes = [16, 16], strides = [1, 1]} : vector<22x16xf32> to vector<16x16xf32>
      %78 = vector.broadcast %76 : f32 to vector<16x16xf32>
      %79 = arith.mulf %78, %77 : vector<16x16xf32>
      %80 = arith.addf %60, %79 : vector<16x16xf32>
      %c9 = arith.constant 9 : index
      %81 = memref.load %arg5[%c9] : memref<49xf32, #tpu.memory_space<smem>>
      %82 = vector.extract_strided_slice %27 {offsets = [1, 0], sizes = [16, 16], strides = [1, 1]} : vector<22x16xf32> to vector<16x16xf32>
      %83 = vector.broadcast %81 : f32 to vector<16x16xf32>
      %84 = arith.mulf %83, %82 : vector<16x16xf32>
      %85 = arith.addf %65, %84 : vector<16x16xf32>
      %c10 = arith.constant 10 : index
      %86 = memref.load %arg5[%c10] : memref<49xf32, #tpu.memory_space<smem>>
      %87 = vector.extract_strided_slice %28 {offsets = [1, 0], sizes = [16, 16], strides = [1, 1]} : vector<22x16xf32> to vector<16x16xf32>
      %88 = vector.broadcast %86 : f32 to vector<16x16xf32>
      %89 = arith.mulf %88, %87 : vector<16x16xf32>
      %90 = arith.addf %70, %89 : vector<16x16xf32>
      %c11 = arith.constant 11 : index
      %91 = memref.load %arg5[%c11] : memref<49xf32, #tpu.memory_space<smem>>
      %92 = vector.extract_strided_slice %29 {offsets = [1, 0], sizes = [16, 16], strides = [1, 1]} : vector<22x16xf32> to vector<16x16xf32>
      %93 = vector.broadcast %91 : f32 to vector<16x16xf32>
      %94 = arith.mulf %93, %92 : vector<16x16xf32>
      %95 = arith.addf %75, %94 : vector<16x16xf32>
      %c12 = arith.constant 12 : index
      %96 = memref.load %arg5[%c12] : memref<49xf32, #tpu.memory_space<smem>>
      %97 = vector.extract_strided_slice %30 {offsets = [1, 0], sizes = [16, 16], strides = [1, 1]} : vector<22x16xf32> to vector<16x16xf32>
      %98 = vector.broadcast %96 : f32 to vector<16x16xf32>
      %99 = arith.mulf %98, %97 : vector<16x16xf32>
      %100 = arith.addf %80, %99 : vector<16x16xf32>
      %c13 = arith.constant 13 : index
      %101 = memref.load %arg5[%c13] : memref<49xf32, #tpu.memory_space<smem>>
      %102 = vector.extract_strided_slice %31 {offsets = [1, 0], sizes = [16, 16], strides = [1, 1]} : vector<22x16xf32> to vector<16x16xf32>
      %103 = vector.broadcast %101 : f32 to vector<16x16xf32>
      %104 = arith.mulf %103, %102 : vector<16x16xf32>
      %105 = arith.addf %85, %104 : vector<16x16xf32>
      %c14 = arith.constant 14 : index
      %106 = memref.load %arg5[%c14] : memref<49xf32, #tpu.memory_space<smem>>
      %107 = vector.extract_strided_slice %25 {offsets = [2, 0], sizes = [16, 16], strides = [1, 1]} : vector<22x16xf32> to vector<16x16xf32>
      %108 = vector.broadcast %106 : f32 to vector<16x16xf32>
      %109 = arith.mulf %108, %107 : vector<16x16xf32>
      %110 = arith.addf %90, %109 : vector<16x16xf32>
      %c15 = arith.constant 15 : index
      %111 = memref.load %arg5[%c15] : memref<49xf32, #tpu.memory_space<smem>>
      %112 = vector.extract_strided_slice %26 {offsets = [2, 0], sizes = [16, 16], strides = [1, 1]} : vector<22x16xf32> to vector<16x16xf32>
      %113 = vector.broadcast %111 : f32 to vector<16x16xf32>
      %114 = arith.mulf %113, %112 : vector<16x16xf32>
      %115 = arith.addf %95, %114 : vector<16x16xf32>
      %c16 = arith.constant 16 : index
      %116 = memref.load %arg5[%c16] : memref<49xf32, #tpu.memory_space<smem>>
      %117 = vector.extract_strided_slice %27 {offsets = [2, 0], sizes = [16, 16], strides = [1, 1]} : vector<22x16xf32> to vector<16x16xf32>
      %118 = vector.broadcast %116 : f32 to vector<16x16xf32>
      %119 = arith.mulf %118, %117 : vector<16x16xf32>
      %120 = arith.addf %100, %119 : vector<16x16xf32>
      %c17 = arith.constant 17 : index
      %121 = memref.load %arg5[%c17] : memref<49xf32, #tpu.memory_space<smem>>
      %122 = vector.extract_strided_slice %28 {offsets = [2, 0], sizes = [16, 16], strides = [1, 1]} : vector<22x16xf32> to vector<16x16xf32>
      %123 = vector.broadcast %121 : f32 to vector<16x16xf32>
      %124 = arith.mulf %123, %122 : vector<16x16xf32>
      %125 = arith.addf %105, %124 : vector<16x16xf32>
      %c18 = arith.constant 18 : index
      %126 = memref.load %arg5[%c18] : memref<49xf32, #tpu.memory_space<smem>>
      %127 = vector.extract_strided_slice %29 {offsets = [2, 0], sizes = [16, 16], strides = [1, 1]} : vector<22x16xf32> to vector<16x16xf32>
      %128 = vector.broadcast %126 : f32 to vector<16x16xf32>
      %129 = arith.mulf %128, %127 : vector<16x16xf32>
      %130 = arith.addf %110, %129 : vector<16x16xf32>
      %c19 = arith.constant 19 : index
      %131 = memref.load %arg5[%c19] : memref<49xf32, #tpu.memory_space<smem>>
      %132 = vector.extract_strided_slice %30 {offsets = [2, 0], sizes = [16, 16], strides = [1, 1]} : vector<22x16xf32> to vector<16x16xf32>
      %133 = vector.broadcast %131 : f32 to vector<16x16xf32>
      %134 = arith.mulf %133, %132 : vector<16x16xf32>
      %135 = arith.addf %115, %134 : vector<16x16xf32>
      %c20 = arith.constant 20 : index
      %136 = memref.load %arg5[%c20] : memref<49xf32, #tpu.memory_space<smem>>
      %137 = vector.extract_strided_slice %31 {offsets = [2, 0], sizes = [16, 16], strides = [1, 1]} : vector<22x16xf32> to vector<16x16xf32>
      %138 = vector.broadcast %136 : f32 to vector<16x16xf32>
      %139 = arith.mulf %138, %137 : vector<16x16xf32>
      %140 = arith.addf %120, %139 : vector<16x16xf32>
      %c21 = arith.constant 21 : index
      %141 = memref.load %arg5[%c21] : memref<49xf32, #tpu.memory_space<smem>>
      %142 = vector.extract_strided_slice %25 {offsets = [3, 0], sizes = [16, 16], strides = [1, 1]} : vector<22x16xf32> to vector<16x16xf32>
      %143 = vector.broadcast %141 : f32 to vector<16x16xf32>
      %144 = arith.mulf %143, %142 : vector<16x16xf32>
      %145 = arith.addf %125, %144 : vector<16x16xf32>
      %c22 = arith.constant 22 : index
      %146 = memref.load %arg5[%c22] : memref<49xf32, #tpu.memory_space<smem>>
      %147 = vector.extract_strided_slice %26 {offsets = [3, 0], sizes = [16, 16], strides = [1, 1]} : vector<22x16xf32> to vector<16x16xf32>
      %148 = vector.broadcast %146 : f32 to vector<16x16xf32>
      %149 = arith.mulf %148, %147 : vector<16x16xf32>
      %150 = arith.addf %130, %149 : vector<16x16xf32>
      %c23 = arith.constant 23 : index
      %151 = memref.load %arg5[%c23] : memref<49xf32, #tpu.memory_space<smem>>
      %152 = vector.extract_strided_slice %27 {offsets = [3, 0], sizes = [16, 16], strides = [1, 1]} : vector<22x16xf32> to vector<16x16xf32>
      %153 = vector.broadcast %151 : f32 to vector<16x16xf32>
      %154 = arith.mulf %153, %152 : vector<16x16xf32>
      %155 = arith.addf %135, %154 : vector<16x16xf32>
      %c24 = arith.constant 24 : index
      %156 = memref.load %arg5[%c24] : memref<49xf32, #tpu.memory_space<smem>>
      %157 = vector.extract_strided_slice %28 {offsets = [3, 0], sizes = [16, 16], strides = [1, 1]} : vector<22x16xf32> to vector<16x16xf32>
      %158 = vector.broadcast %156 : f32 to vector<16x16xf32>
      %159 = arith.mulf %158, %157 : vector<16x16xf32>
      %160 = arith.addf %140, %159 : vector<16x16xf32>
      %c25 = arith.constant 25 : index
      %161 = memref.load %arg5[%c25] : memref<49xf32, #tpu.memory_space<smem>>
      %162 = vector.extract_strided_slice %29 {offsets = [3, 0], sizes = [16, 16], strides = [1, 1]} : vector<22x16xf32> to vector<16x16xf32>
      %163 = vector.broadcast %161 : f32 to vector<16x16xf32>
      %164 = arith.mulf %163, %162 : vector<16x16xf32>
      %165 = arith.addf %145, %164 : vector<16x16xf32>
      %c26 = arith.constant 26 : index
      %166 = memref.load %arg5[%c26] : memref<49xf32, #tpu.memory_space<smem>>
      %167 = vector.extract_strided_slice %30 {offsets = [3, 0], sizes = [16, 16], strides = [1, 1]} : vector<22x16xf32> to vector<16x16xf32>
      %168 = vector.broadcast %166 : f32 to vector<16x16xf32>
      %169 = arith.mulf %168, %167 : vector<16x16xf32>
      %170 = arith.addf %150, %169 : vector<16x16xf32>
      %c27 = arith.constant 27 : index
      %171 = memref.load %arg5[%c27] : memref<49xf32, #tpu.memory_space<smem>>
      %172 = vector.extract_strided_slice %31 {offsets = [3, 0], sizes = [16, 16], strides = [1, 1]} : vector<22x16xf32> to vector<16x16xf32>
      %173 = vector.broadcast %171 : f32 to vector<16x16xf32>
      %174 = arith.mulf %173, %172 : vector<16x16xf32>
      %175 = arith.addf %155, %174 : vector<16x16xf32>
      %c28 = arith.constant 28 : index
      %176 = memref.load %arg5[%c28] : memref<49xf32, #tpu.memory_space<smem>>
      %177 = vector.extract_strided_slice %25 {offsets = [4, 0], sizes = [16, 16], strides = [1, 1]} : vector<22x16xf32> to vector<16x16xf32>
      %178 = vector.broadcast %176 : f32 to vector<16x16xf32>
      %179 = arith.mulf %178, %177 : vector<16x16xf32>
      %180 = arith.addf %160, %179 : vector<16x16xf32>
      %c29 = arith.constant 29 : index
      %181 = memref.load %arg5[%c29] : memref<49xf32, #tpu.memory_space<smem>>
      %182 = vector.extract_strided_slice %26 {offsets = [4, 0], sizes = [16, 16], strides = [1, 1]} : vector<22x16xf32> to vector<16x16xf32>
      %183 = vector.broadcast %181 : f32 to vector<16x16xf32>
      %184 = arith.mulf %183, %182 : vector<16x16xf32>
      %185 = arith.addf %165, %184 : vector<16x16xf32>
      %c30 = arith.constant 30 : index
      %186 = memref.load %arg5[%c30] : memref<49xf32, #tpu.memory_space<smem>>
      %187 = vector.extract_strided_slice %27 {offsets = [4, 0], sizes = [16, 16], strides = [1, 1]} : vector<22x16xf32> to vector<16x16xf32>
      %188 = vector.broadcast %186 : f32 to vector<16x16xf32>
      %189 = arith.mulf %188, %187 : vector<16x16xf32>
      %190 = arith.addf %170, %189 : vector<16x16xf32>
      %c31 = arith.constant 31 : index
      %191 = memref.load %arg5[%c31] : memref<49xf32, #tpu.memory_space<smem>>
      %192 = vector.extract_strided_slice %28 {offsets = [4, 0], sizes = [16, 16], strides = [1, 1]} : vector<22x16xf32> to vector<16x16xf32>
      %193 = vector.broadcast %191 : f32 to vector<16x16xf32>
      %194 = arith.mulf %193, %192 : vector<16x16xf32>
      %195 = arith.addf %175, %194 : vector<16x16xf32>
      %c32 = arith.constant 32 : index
      %196 = memref.load %arg5[%c32] : memref<49xf32, #tpu.memory_space<smem>>
      %197 = vector.extract_strided_slice %29 {offsets = [4, 0], sizes = [16, 16], strides = [1, 1]} : vector<22x16xf32> to vector<16x16xf32>
      %198 = vector.broadcast %196 : f32 to vector<16x16xf32>
      %199 = arith.mulf %198, %197 : vector<16x16xf32>
      %200 = arith.addf %180, %199 : vector<16x16xf32>
      %c33 = arith.constant 33 : index
      %201 = memref.load %arg5[%c33] : memref<49xf32, #tpu.memory_space<smem>>
      %202 = vector.extract_strided_slice %30 {offsets = [4, 0], sizes = [16, 16], strides = [1, 1]} : vector<22x16xf32> to vector<16x16xf32>
      %203 = vector.broadcast %201 : f32 to vector<16x16xf32>
      %204 = arith.mulf %203, %202 : vector<16x16xf32>
      %205 = arith.addf %185, %204 : vector<16x16xf32>
      %c34 = arith.constant 34 : index
      %206 = memref.load %arg5[%c34] : memref<49xf32, #tpu.memory_space<smem>>
      %207 = vector.extract_strided_slice %31 {offsets = [4, 0], sizes = [16, 16], strides = [1, 1]} : vector<22x16xf32> to vector<16x16xf32>
      %208 = vector.broadcast %206 : f32 to vector<16x16xf32>
      %209 = arith.mulf %208, %207 : vector<16x16xf32>
      %210 = arith.addf %190, %209 : vector<16x16xf32>
      %c35 = arith.constant 35 : index
      %211 = memref.load %arg5[%c35] : memref<49xf32, #tpu.memory_space<smem>>
      %212 = vector.extract_strided_slice %25 {offsets = [5, 0], sizes = [16, 16], strides = [1, 1]} : vector<22x16xf32> to vector<16x16xf32>
      %213 = vector.broadcast %211 : f32 to vector<16x16xf32>
      %214 = arith.mulf %213, %212 : vector<16x16xf32>
      %215 = arith.addf %195, %214 : vector<16x16xf32>
      %c36 = arith.constant 36 : index
      %216 = memref.load %arg5[%c36] : memref<49xf32, #tpu.memory_space<smem>>
      %217 = vector.extract_strided_slice %26 {offsets = [5, 0], sizes = [16, 16], strides = [1, 1]} : vector<22x16xf32> to vector<16x16xf32>
      %218 = vector.broadcast %216 : f32 to vector<16x16xf32>
      %219 = arith.mulf %218, %217 : vector<16x16xf32>
      %220 = arith.addf %200, %219 : vector<16x16xf32>
      %c37 = arith.constant 37 : index
      %221 = memref.load %arg5[%c37] : memref<49xf32, #tpu.memory_space<smem>>
      %222 = vector.extract_strided_slice %27 {offsets = [5, 0], sizes = [16, 16], strides = [1, 1]} : vector<22x16xf32> to vector<16x16xf32>
      %223 = vector.broadcast %221 : f32 to vector<16x16xf32>
      %224 = arith.mulf %223, %222 : vector<16x16xf32>
      %225 = arith.addf %205, %224 : vector<16x16xf32>
      %c38 = arith.constant 38 : index
      %226 = memref.load %arg5[%c38] : memref<49xf32, #tpu.memory_space<smem>>
      %227 = vector.extract_strided_slice %28 {offsets = [5, 0], sizes = [16, 16], strides = [1, 1]} : vector<22x16xf32> to vector<16x16xf32>
      %228 = vector.broadcast %226 : f32 to vector<16x16xf32>
      %229 = arith.mulf %228, %227 : vector<16x16xf32>
      %230 = arith.addf %210, %229 : vector<16x16xf32>
      %c39 = arith.constant 39 : index
      %231 = memref.load %arg5[%c39] : memref<49xf32, #tpu.memory_space<smem>>
      %232 = vector.extract_strided_slice %29 {offsets = [5, 0], sizes = [16, 16], strides = [1, 1]} : vector<22x16xf32> to vector<16x16xf32>
      %233 = vector.broadcast %231 : f32 to vector<16x16xf32>
      %234 = arith.mulf %233, %232 : vector<16x16xf32>
      %235 = arith.addf %215, %234 : vector<16x16xf32>
      %c40 = arith.constant 40 : index
      %236 = memref.load %arg5[%c40] : memref<49xf32, #tpu.memory_space<smem>>
      %237 = vector.extract_strided_slice %30 {offsets = [5, 0], sizes = [16, 16], strides = [1, 1]} : vector<22x16xf32> to vector<16x16xf32>
      %238 = vector.broadcast %236 : f32 to vector<16x16xf32>
      %239 = arith.mulf %238, %237 : vector<16x16xf32>
      %240 = arith.addf %220, %239 : vector<16x16xf32>
      %c41 = arith.constant 41 : index
      %241 = memref.load %arg5[%c41] : memref<49xf32, #tpu.memory_space<smem>>
      %242 = vector.extract_strided_slice %31 {offsets = [5, 0], sizes = [16, 16], strides = [1, 1]} : vector<22x16xf32> to vector<16x16xf32>
      %243 = vector.broadcast %241 : f32 to vector<16x16xf32>
      %244 = arith.mulf %243, %242 : vector<16x16xf32>
      %245 = arith.addf %225, %244 : vector<16x16xf32>
      %c42 = arith.constant 42 : index
      %246 = memref.load %arg5[%c42] : memref<49xf32, #tpu.memory_space<smem>>
      %247 = vector.extract_strided_slice %25 {offsets = [6, 0], sizes = [16, 16], strides = [1, 1]} : vector<22x16xf32> to vector<16x16xf32>
      %248 = vector.broadcast %246 : f32 to vector<16x16xf32>
      %249 = arith.mulf %248, %247 : vector<16x16xf32>
      %250 = arith.addf %230, %249 : vector<16x16xf32>
      %c43 = arith.constant 43 : index
      %251 = memref.load %arg5[%c43] : memref<49xf32, #tpu.memory_space<smem>>
      %252 = vector.extract_strided_slice %26 {offsets = [6, 0], sizes = [16, 16], strides = [1, 1]} : vector<22x16xf32> to vector<16x16xf32>
      %253 = vector.broadcast %251 : f32 to vector<16x16xf32>
      %254 = arith.mulf %253, %252 : vector<16x16xf32>
      %255 = arith.addf %235, %254 : vector<16x16xf32>
      %c44 = arith.constant 44 : index
      %256 = memref.load %arg5[%c44] : memref<49xf32, #tpu.memory_space<smem>>
      %257 = vector.extract_strided_slice %27 {offsets = [6, 0], sizes = [16, 16], strides = [1, 1]} : vector<22x16xf32> to vector<16x16xf32>
      %258 = vector.broadcast %256 : f32 to vector<16x16xf32>
      %259 = arith.mulf %258, %257 : vector<16x16xf32>
      %260 = arith.addf %240, %259 : vector<16x16xf32>
      %c45 = arith.constant 45 : index
      %261 = memref.load %arg5[%c45] : memref<49xf32, #tpu.memory_space<smem>>
      %262 = vector.extract_strided_slice %28 {offsets = [6, 0], sizes = [16, 16], strides = [1, 1]} : vector<22x16xf32> to vector<16x16xf32>
      %263 = vector.broadcast %261 : f32 to vector<16x16xf32>
      %264 = arith.mulf %263, %262 : vector<16x16xf32>
      %265 = arith.addf %245, %264 : vector<16x16xf32>
      %c46 = arith.constant 46 : index
      %266 = memref.load %arg5[%c46] : memref<49xf32, #tpu.memory_space<smem>>
      %267 = vector.extract_strided_slice %29 {offsets = [6, 0], sizes = [16, 16], strides = [1, 1]} : vector<22x16xf32> to vector<16x16xf32>
      %268 = vector.broadcast %266 : f32 to vector<16x16xf32>
      %269 = arith.mulf %268, %267 : vector<16x16xf32>
      %270 = arith.addf %250, %269 : vector<16x16xf32>
      %c47 = arith.constant 47 : index
      %271 = memref.load %arg5[%c47] : memref<49xf32, #tpu.memory_space<smem>>
      %272 = vector.extract_strided_slice %30 {offsets = [6, 0], sizes = [16, 16], strides = [1, 1]} : vector<22x16xf32> to vector<16x16xf32>
      %273 = vector.broadcast %271 : f32 to vector<16x16xf32>
      %274 = arith.mulf %273, %272 : vector<16x16xf32>
      %275 = arith.addf %255, %274 : vector<16x16xf32>
      %c48 = arith.constant 48 : index
      %276 = memref.load %arg5[%c48] : memref<49xf32, #tpu.memory_space<smem>>
      %277 = vector.extract_strided_slice %31 {offsets = [6, 0], sizes = [16, 16], strides = [1, 1]} : vector<22x16xf32> to vector<16x16xf32>
      %278 = vector.broadcast %276 : f32 to vector<16x16xf32>
      %279 = arith.mulf %278, %277 : vector<16x16xf32>
      %280 = arith.addf %260, %279 : vector<16x16xf32>
      %281 = arith.addf %280, %265 : vector<16x16xf32>
      %282 = arith.addf %270, %275 : vector<16x16xf32>
      %283 = arith.addf %281, %282 : vector<16x16xf32>
      %284 = arith.negf %283 : vector<16x16xf32>
      %285 = math.exp %284 : vector<16x16xf32>
      %cst_27 = arith.constant 1.000000e+00 : f32
      %286 = vector.broadcast %cst_27 : f32 to vector<16x16xf32>
      %287 = arith.addf %286, %285 : vector<16x16xf32>
      %288 = arith.divf %286, %287 : vector<16x16xf32>
      %cst_28 = arith.constant 1.000000e+00 : f32
      %289 = vector.broadcast %cst_28 : f32 to vector<16x16xf32>
      %290 = arith.addf %288, %289 : vector<16x16xf32>
      %c0_29 = arith.constant 0 : index
      %c0_30 = arith.constant 0 : index
      %291 = vector.load %arg9[%c0_29, %c0_30] : memref<16x16xf32, #tpu.memory_space<vmem>>, vector<16x16xf32>
      tpu.vector_store %arg9[%c0_29, %c0_30], %290 {strides = array<i32>} : memref<16x16xf32, #tpu.memory_space<vmem>>, vector<16x16xf32>,
    } else {
    }
    %c0 = arith.constant 0 : index
    %c0_1 = arith.constant 0 : index
    %c0_2 = arith.constant 0 : index
    %c0_3 = arith.constant 0 : index
    %3 = vector.load %arg4[%c0, %c0_1, %c0_2, %c0_3] : memref<1x4x8x8xf32, #tpu.memory_space<vmem>>, vector<1x4x8x8xf32>
    %4 = vector.shape_cast %3 : vector<1x4x8x8xf32> to vector<4x8x8xf32>
    %5 = vector.shape_cast %4 : vector<4x8x8xf32> to vector<32x8xf32>
    %c0_4 = arith.constant 0 : index
    %c0_5 = arith.constant 0 : index
    %6 = vector.load %arg7[%c0_4, %c0_5] : memref<8x16xf32, #tpu.memory_space<vmem>>, vector<8x16xf32>
    %cst = arith.constant dense<0.000000e+00> : vector<32x16xf32>
    %7 = tpu.matmul %5, %6, %cst {dimension_numbers = #tpu.dot_dimension_numbers<[1], [0], [0], [1], [0, 0, 1, 1], [], []>} : vector<32x8xf32>, vector<8x16xf32>, vector<32x16xf32> -> vector<32x16xf32>
    %8 = vector.shape_cast %7 : vector<32x16xf32> to vector<4x8x16xf32>
    %c0_6 = arith.constant 0 : index
    %c0_7 = arith.constant 0 : index
    %9 = vector.load %arg6[%c0_6, %c0_7] : memref<16x8xf32, #tpu.memory_space<vmem>>, vector<16x8xf32>
    %10 = vector.shape_cast %9 : vector<16x8xf32> to vector<1x16x8xf32>
    %11 = vector.broadcast %10 : vector<1x16x8xf32> to vector<4x16x8xf32>
    %cst_8 = arith.constant dense<0.000000e+00> : vector<4x16x16xf32>
    %12 = tpu.matmul %11, %8, %cst_8 {dimension_numbers = #tpu.dot_dimension_numbers<[2], [1], [1], [2], [0, 0, 0, 1, 1, 2], [0], [0]>} : vector<4x16x8xf32>, vector<4x8x16xf32>, vector<4x16x16xf32> -> vector<4x16x16xf32>
    %c0_9 = arith.constant 0 : index
    %c0_10 = arith.constant 0 : index
    %c0_11 = arith.constant 0 : index
    %c0_12 = arith.constant 0 : index
    %13 = vector.load %arg3[%c0_9, %c0_10, %c0_11, %c0_12] : memref<1x4x16x16xf32, #tpu.memory_space<vmem>>, vector<1x4x16x16xf32>
    %14 = vector.shape_cast %13 : vector<1x4x16x16xf32> to vector<4x16x16xf32>
    %c0_13 = arith.constant 0 : index
    %c0_14 = arith.constant 0 : index
    %15 = vector.load %arg9[%c0_13, %c0_14] : memref<16x16xf32, #tpu.memory_space<vmem>>, vector<16x16xf32>
    %16 = vector.shape_cast %15 : vector<16x16xf32> to vector<1x16x16xf32>
    %17 = vector.broadcast %16 : vector<1x16x16xf32> to vector<4x16x16xf32>
    %18 = arith.mulf %17, %14 : vector<4x16x16xf32>
    %19 = arith.addf %18, %12 : vector<4x16x16xf32>
    %c0_15 = arith.constant 0 : index
    %c0_16 = arith.constant 0 : index
    %c0_17 = arith.constant 0 : index
    %c0_18 = arith.constant 0 : index
    %20 = vector.load %arg8[%c0_15, %c0_16, %c0_17, %c0_18] : memref<1x4x16x16xf32, #tpu.memory_space<vmem>>, vector<1x4x16x16xf32>
    %21 = vector.shape_cast %20 : vector<1x4x16x16xf32> to vector<4x16x16xf32>
    %22 = vector.shape_cast %19 : vector<4x16x16xf32> to vector<1x4x16x16xf32>
    tpu.vector_store %arg8[%c0_15, %c0_16, %c0_17, %c0_18], %22 {strides = array<i32>} : memref<1x4x16x16xf32, #tpu.memory_space<vmem>>, vector<1x4x16x16xf32>,
    return
  }
  func.func @transform_0(%arg0: i32, %arg1: i32) -> (i32, i32, i32) {
    %c0_i32 = arith.constant 0 : i32
    %c0_i32_0 = arith.constant 0 : i32
    %c0_i32_1 = arith.constant 0 : i32
    return %arg0, %c0_i32, %c0_i32_0 : i32, i32, i32
  }
  func.func @transform_1(%arg0: i32, %arg1: i32) -> (i32, i32, i32, i32) {
    %c0_i32 = arith.constant 0 : i32
    %c0_i32_0 = arith.constant 0 : i32
    %c0_i32_1 = arith.constant 0 : i32
    return %arg0, %arg1, %c0_i32, %c0_i32_0 : i32, i32, i32, i32
  }
  func.func @transform_2(%arg0: i32, %arg1: i32) -> (i32, i32, i32, i32) {
    %c0_i32 = arith.constant 0 : i32
    %c0_i32_0 = arith.constant 0 : i32
    %c0_i32_1 = arith.constant 0 : i32
    return %arg0, %arg1, %c0_i32, %c0_i32_0 : i32, i32, i32, i32
  }
  func.func @transform_3(%arg0: i32, %arg1: i32) -> i32 {
    %c0_i32 = arith.constant 0 : i32
    %c0_i32_0 = arith.constant 0 : i32
    return %c0_i32 : i32
  }
  func.func @transform_4(%arg0: i32, %arg1: i32) -> (i32, i32) {
    %c0_i32 = arith.constant 0 : i32
    %c0_i32_0 = arith.constant 0 : i32
    %c0_i32_1 = arith.constant 0 : i32
    return %c0_i32, %c0_i32_0 : i32, i32
  }
  func.func @transform_5(%arg0: i32, %arg1: i32) -> (i32, i32) {
    %c0_i32 = arith.constant 0 : i32
    %c0_i32_0 = arith.constant 0 : i32
    %c0_i32_1 = arith.constant 0 : i32
    return %c0_i32, %c0_i32_0 : i32, i32
  }
  func.func @transform_6(%arg0: i32, %arg1: i32) -> (i32, i32, i32, i32) {
    %c0_i32 = arith.constant 0 : i32
    %c0_i32_0 = arith.constant 0 : i32
    %c0_i32_1 = arith.constant 0 : i32
    return %arg0, %arg1, %c0_i32, %c0_i32_0 : i32, i32, i32, i32
  }
}

</mosaic_0001>

<bundles_post_ra>
// kernel: tpu_custom_call.1
= control target key start
LH: loop header
LB: loop body
LE: loop exit
PB: predicated region body
PF: predicated region fallthrough
CT: control target
= control target key end

     0   :  { %s3014_s0 = inlined_call_operand.vmem [shape: f32[2,22,22], index: 0, kind: input, shape index: {}]   ;;  %s3015_s1 = inlined_call_operand.hbm [shape: f32[2,4,16,16], index: 1, kind: input, shape index: {}]   ;;  %s3016_s2 = inlined_call_operand.vmem [shape: f32[2,4,8,8], index: 2, kind: input, shape index: {}]   ;;  %s3017_s3 = inlined_call_operand.vmem [shape: f32[49], index: 3, kind: input, shape index: {}]   ;;  %s3018_s4 = inlined_call_operand.vmem [shape: f32[16,8], index: 4, kind: input, shape index: {}]   ;;  %s3019_s5 = inlined_call_operand.vmem [shape: f32[8,16], index: 5, kind: input, shape index: {}]   ;;  %s3020_s6 = inlined_call_operand.hbm [shape: f32[2,4,16,16], index: 6, kind: output, shape index: {}]  }
   0x1   :  { %3026 = sst [smem:[#allocation15_spill]] %s3017_s3 }
   0x2   :  { %11 = vsyncpa [#allocation4], 0 }
   0x3   :  { %13 = vsyncpa [#allocation4 + $0x1], 0 }
   0x4   :  { %14 = vsyncpa [#allocation6], 0 }
   0x5   :  { %15 = vsyncpa [#allocation5], 0 }
   0x6   :  { %17 = vsyncpa [#allocation5 + $0x1], 0  ;;  %s2353_s21 = smov 0   ;;  %s2355_s22 = smov 0  }
   0x7   :  { %s2357_s23 = smov 0   ;;  %s2359_s24 = smov 0  }
   0x8   :  { %s2361_s25 = smov 0   ;;  %s2363_s26 = smov 0  }
   0x9 LB: > { %3027 = sst [smem:[#allocation12_spill]] %s2280_s21  ;;  %s1945_s27 = sadd.s32 4294967295, %s2300_s26   ;;  %s2300_s26 = sphi %s2363_s26, %s23_s26   ;;  %s2296_s25 = sphi %s2361_s25, %s3051_s25   ;;  %s2292_s24 = sphi %s2359_s24, %s3050_s24   ;;  %s2288_s23 = sphi %s2357_s23, %s3049_s23   ;;  %s2284_s22 = sphi %s2355_s22, %s3048_s22   ;;  %s2280_s21 = sphi %s2353_s21, %s3047_s21  }
   0xa   : > { %3028 = sst [smem:[#allocation13_spill]] %s2300_s26  ;;  %s1946_s28 = sadd.s32 4294967294, %s2300_s26  }
   0xb   : > { %p77_p0 = scmp.ne.s32.totalorder %s2288_s23, %s2284_s22  ;;  %p78_p1 = scmp.eq.s32.totalorder %s2300_s26, 0 }
   0xc   : > { %p83_p2 = scmp.ne.s32.totalorder %s2284_s22, %s2280_s21  ;;  %p2391_p3 = scmp.eq.s32.totalorder %s1945_s27, 0 }
   0xd   : > { %p200_p4 = scmp.eq.s32.totalorder %s1945_s27, 1  ;;  %p2395_p5 = por %p78_p1, %p77_p0 }
   0xe   : > { %p206_p6 = scmp.eq.s32.totalorder %s1946_s28, 1  ;;  %p2401_p7 = por %p2391_p3, %p83_p2 }
   0xf   : > { %p2405_p8 = por %p200_p4, %p77_p0  ;;  %p1947_p10 = scmp.ge.s32.totalorder %s2300_s26, 1 }
  0x10   : > { %p2409_p9 = por %p206_p6, %p83_p2  ;;  %p213_p11 = scmp.lt.s32.totalorder %s2300_s26, 3 }
  0x11   : > { %s3032_s9 = scalar_select %p2405_p8, 1, 0 }
  0x12   : > { %s3033_s10 = scalar_select %p2409_p9, 1, 0 }
  0x13   : > { %s3035_s3 = sld [smem:[#allocation15_spill]]  ;;  %p2418_p12 = pnand %p1947_p10, %p213_p11 }
  0x14   : > { %3034 = sst [smem:[#allocation14_spill]] %s3033_s10  ;;  %p2097_p0 = scmp.lt.s32.totalorder %s2300_s26, 2 }
  0x15   : > { %p2084_p1 = pneg %p2418_p12  ;;  %s35_s17 = sadd.s32 1, %s2296_s25 }
  0x16   : > { %p2428_p2 = pnand %p2097_p0, %p2395_p5  ;;  %p2439_p6 = scmp.ge.s32.totalorder %s35_s17, 2 }
  0x17   : > { %p2434_p4 = pnand %p2084_p1, %p2391_p3  ;;  %s251_s19 = sand.u32 1, %s2288_s23  }
  0x19   : > { %s226_s13 = sshll.u32 %s3035_s3, 4  ;;  %p2175_p11 = pneg %p2434_p4  ;;  %s227_s13 = int_to_ptr.vmem [resolvable:$true] %s226_s13 }
  0x1a   : > { %s2173_s20 = scalar_lea.vmem %s227_s13, 16  ;;  %p2181_p13 = scmp.lt.s32.totalorder %s227_s13, %s227_s13 }
  0x1b   : > { %p2174_p10 = scmp.ne.s32.totalorder %s227_s13, %s2173_s20  ;;  %p2182_p9 = scmp.lt.s32.totalorder %s2173_s20, %s2173_s20 }
  0x1d   : > { %p2176_p5 = pnand %p2175_p11, %p2174_p10  ;;  %p2183_p8 = por %p2182_p9, %p2181_p13 }
  0x1f   : > { %p2177_p0 = pneg %p2176_p5 }
  0x21   : > { %p2184_p1 = pnand %p2183_p8, %p2177_p0 }
  0x23   : > { %2187 = shalt.err (!%p2184_p1)
}
  0x24   : > { %s2302_s27 = smov [#allocation7]   ;;  %s3053_s17 = smov (%p2439_p6, %s35_s17), 0 }
  0x25   : > { %2087 = dma.vmem_to_smem (!%p2434_p4), %s227_s13, 16, %s2302_s27, [#allocation6]  }
  0x26   : > { %s1950_s28 = sshll.u32 %s251_s19, 6  ;;  %s65_s7 = ssub.s32 %s2296_s25, %s3053_s17 }
  0x27   : > { %p68_p10 = scmp.eq.s32.totalorder %s65_s7, 0  ;;  %s2027_s11 = sshll.u32 %s2296_s25, 10 }
  0x28   : > { %s264_s29 = scalar_lea.hbm %s3015_s1, %s2027_s11  ;;  %s255_s16 = scalar_lea.vmem [#allocation3], %s1950_s28 }
  0x29   : > { %s265_s3 = sshll.u32 %s255_s16, 4  ;;  %s3040_s26 = sadd.s32 1, %s2288_s23  ;;  %s266_s3 = int_to_ptr.vmem [resolvable:$true] %s265_s3 }
  0x2a   : > { %s2461_s10 = scalar_select %p68_p10, %s2288_s23, %s3040_s26  }
  0x2b   : > { %s252_s21 = scalar_lea.sflag [#allocation4], %s251_s19  ;;  %p2190_p8 = pneg %p2428_p2 }
  0x2c   : > { %s2201_s13 = scalar_lea.vmem %s266_s3, 1024  ;;  %s2303_s18 = smov [#allocation3]  }
  0x2d   : > { %p2202_p9 = scmp.ne.s32.totalorder %s266_s3, %s2201_s13  ;;  %s2206_s27 = sshll.u32 %s2303_s18, 4  ;;  %s2207_s27 = int_to_ptr.vmem [resolvable:$false] %s2206_s27 }
  0x2e   : > { %s2208_s7 = scalar_lea.vmem %s2207_s27, 2048  ;;  %p2209_p6 = scmp.lt.s32.totalorder %s266_s3, %s2207_s27 }
  0x2f   : > { %p2204_p13 = pnand %p2202_p9, %p2190_p8  ;;  %p2210_p11 = scmp.lt.s32.totalorder %s2208_s7, %s2201_s13 }
  0x31   : > { %p2205_p4 = pneg %p2204_p13  ;;  %p2211_p5 = por %p2210_p11, %p2209_p6 }
  0x33   : > { %p2212_p0 = pnand %p2211_p5, %p2205_p4 }
  0x35   : > { %2215 = shalt.err (!%p2212_p0)
}
  0x36   : > { %s2304_s28 = smov 128   ;;  %s2305_s26 = smov 8  }
  0x37   : > { %2091 = dma.hbm_to_vmem [thread:$0]  (!%p2428_p2), %s264_s29, 1024, %s266_s3, %s252_s21, %s2304_s28, %s2304_s28, %s2305_s26  }
  0x38   : > { %290 = sbr.rel (%p2418_p12) target bundleno = 529 (0x211), region = 44  ;;  %s2470_s19 = sand.u32 (!%p2418_p12), 1, %s2284_s22  }
  0x39   : > { %s1954_s11 = sshll.u32 (!%p2418_p12), %s2470_s19, 6  ;;  %s293_s12 = scalar_lea.sflag (!%p2418_p12), [#allocation4], %s2470_s19 }
  0x3a   : > { %s2476_s20 = scalar_lea.vmem (!%p2418_p12), [#allocation3], %s1954_s11 }
  0x3d   : > { %2267 = dma.done.wait (%p2401_p7), %s293_s12, 1024  }
  0x3e   : > { %2269 = vsyncadd (%p2401_p7), %s293_s12, 4294966272 }
  0x3f   : > { %2271 = dma.done.wait (%p2391_p3), [#allocation6], 16  }
  0x40   : > { %2273 = vsyncadd (%p2391_p3), [#allocation6], 4294967280 }
  0x41   : > { %305 = sfence }
  0x42   : > { %p344_p12 = scmp.lt.s32.totalorder %s2292_s24, 1  ;;  %v1357_v0 = vld [vmem:[%s3019_s5] sm:$0xff]  ;;  %s1970_s29 = sld [smem:[#allocation7 + $0xb]]  ;;  %vm442_vm0 = vcmask 1046528   ;;  %vm1358_vm1 = vcmask 64512   ;;  %vm590_vm2 = vcmask 1045504  }
  0x43   : > { %2047 = vmatprep.subr.mxu0 %v1357_v0  ;;  %s1966_s8 = sld [smem:[#allocation7 + $0x7]]  ;;  %vm738_vm3 = vcmask 1044480   ;;  %s2309_s18 = smov 126   ;;  %vm1018_vm4 = vcmask 1042432   ;;  %vm1166_vm5 = vcmask 1041408   ;;  %vm886_vm6 = vcmask 1043456  }
  0x44   : > { %s345_s14 = scalar_select %p344_p12, %s2292_s24, 1  ;;  %2048 = vmatpush3.msra.mxu0 %v1357_v0  ;;  %vm1350_vm7 = vcmask 130048  }
  0x45   : > { %s1974_s16 = sld [smem:[#allocation7 + $0xf]]  ;;  %p3041_p7 = scmp.ne.s32.totalorder %s3032_s9, 0 }
  0x46   : > { %s2075_s15 = smul.u32 24, %s345_s14  ;;  %s1978_s13 = sld [smem:[#allocation7 + $0x13]] }
  0x47   : > { %s2508_s7 = sld [smem:[#allocation7 + $0x17]]  ;;  %s2028_s28 = sshll.u32 %s345_s14, 5 }
  0x48   : > { %s2494_s30 = scalar_lea.vmem %s3014_s0, %s2075_s15  ;;  %v520_v3 = vstv %s1970_s29  ;;  %s2512_s26 = sld [smem:[#allocation7 + $0x1b]] }
  0x49   : > { %v2497_v1 = vld [vmem:[%s2494_s30] sm:$0xff]  ;;  %v2500_v2 = vld [vmem:[%s2494_s30 + $0x8] sm:$0xff]  ;;  %v2503_v4 = vld [vmem:[%s2494_s30 + $0x10] sm:$0x3f]  ;;  %v435_v8 = vstv %s1966_s8  ;;  %s358_s21 = scalar_lea.vmem %s3016_s2, %s2028_s28  ;;  %s2306_s29 = smov 127  }
  0x4a   : > { %v521_v5 = vmul.f32 %v520_v3, %v2497_v1  ;;  %v522_v6 = vmul.f32 %v520_v3, %v2500_v2  ;;  %v523_v7 = vmul.f32 %v520_v3, %v2503_v4  ;;  %v436_v11 = vmul.f32 %v435_v8, %v2497_v1  ;;  %v1353_v17 = vld [vmem:[%s358_s21] sm:$0xff]  ;;  %v1354_v18 = vld [vmem:[%s358_s21 + $0x8] sm:$0xff]  ;;  %v1355_v23 = vld [vmem:[%s358_s21 + $0x10] sm:$0xff]  ;;  %s2529_s14 = sld [smem:[#allocation7 + $0x23]]  ;;  %s2307_s8 = smov 3  }
  0x4b   : > { %v437_v12 = vmul.f32 %v435_v8, %v2500_v2  ;;  %v438_v14 = vmul.f32 %v435_v8, %v2503_v4  ;;  %v605_v15 = vstv %s1974_s16  ;;  %2049 = vmatprep.mubr.msk.f32.mxu0 %vm1358_vm1, %v1353_v17  ;;  %v1356_v32 = vld [vmem:[%s358_s21 + $0x18] sm:$0xff]  ;;  %s1998_s15 = sld [smem:[#allocation7 + $0x27]]  ;;  %s2308_s16 = smov 2  }
  0x4c   : > { %v527_v9 = vrot.slane %v521_v5, 1  ;;  %v528_v10 = vrot.slane %v522_v6, 1  ;;  %v530_v13 = vrot.slane %v523_v7, 1  ;;  %v689_v16 = vstv %s1978_s13  ;;  %2050 = vmatmul.mubr.msk.f32.vlgmr.msra.gmra.mxu0 %vm1358_vm1, %v1354_v18  ;;  %s2002_s13 = sld [smem:[#allocation7 + $0x2b]]  ;;  %s2311_s28 = smov 125  }
  0x4d   : > { %v443_v20 = vrot.slane %v436_v11, 1  ;;  %v444_v21 = vrot.slane %v437_v12, 1  ;;  %v607_v22 = vmul.f32 %v605_v15, %v2500_v2  ;;  %v446_v25 = vrot.slane %v438_v14, 1  ;;  %2052 = vmatprep.mubr.msk.f32.mxu0 %vm1358_vm1, %v1355_v23  ;;  %s2006_s27 = sld [smem:[#allocation7 + $0x2f]] }
  0x4e   : > { %v529_v19 = vsel %vm442_vm0, %v527_v9, %v528_v10  ;;  %v531_v24 = vsel %vm442_vm0, %v528_v10, %v530_v13  ;;  %v608_v26 = vmul.f32 %v605_v15, %v2503_v4  ;;  %v606_v27 = vmul.f32 %v605_v15, %v2497_v1  ;;  %s1968_s12 = sld [smem:[#allocation7 + $0x9]] }
  0x4f   : > { %532 = vrot.lane.b32.xlu1 %v529_v19, %s2306_s29  ;;  %v445_v28 = vsel %vm442_vm0, %v443_v20, %v444_v21  ;;  %v613_v29 = vrot.slane %v607_v22, 2  ;;  %v691_v30 = vmul.f32 %v689_v16, %v2500_v2  ;;  %v692_v31 = vmul.f32 %v689_v16, %v2503_v4  ;;  %s2584_s3 = sld [smem:[#allocation7 + $0x6]] }
  0x50   : > { %448 = vrot.lane.b32.xlu0 %v445_v28, %s2307_s8  ;;  %v615_v33 = vrot.slane %v608_v26, 2  ;;  %v447_v34 = vsel %vm442_vm0, %v444_v21, %v446_v25  ;;  %v612_v35 = vrot.slane %v606_v27, 2  ;;  %v690_v36 = vmul.f32 %v689_v16, %v2497_v1  ;;  %2053 = vmatmul.mubr.msk.f32.gmra.mxu0 %vm1358_vm1, %v1356_v32  ;;  %s1969_s21 = sld [smem:[#allocation7 + $0xa]] }
  0x51   : > { %v774_v37 = vstv %s2508_s7  ;;  %v697_v38 = vrot.slane %v691_v30, 2  ;;  %v699_v39 = vrot.slane %v692_v31, 2  ;;  %v858_v43 = vstv %s2512_s26  ;;  %s2310_s7 = smov 1   ;;  %s2578_s26 = sld [smem:[#allocation7 + $0x5]] }
  0x52   : > { %v616_v40 = vsel %vm590_vm2, %v613_v29, %v615_v33  ;;  %v776_v41 = vmul.f32 %v774_v37, %v2500_v2  ;;  %v777_v42 = vmul.f32 %v774_v37, %v2503_v4  ;;  %v614_v44 = vsel %vm590_vm2, %v612_v35, %v613_v29 }
  0x53   : > { %534 = vrot.lane.b32.xlu1 %v531_v24, %s2306_s29  ;;  %v696_v45 = vrot.slane %v690_v36, 2  ;;  %v775_v46 = vmul.f32 %v774_v37, %v2497_v1  ;;  %v700_v47 = vsel %vm590_vm2, %v697_v38, %v699_v39  ;;  %v860_v48 = vmul.f32 %v858_v43, %v2500_v2 }
  0x54   : > { %450 = vrot.lane.b32.xlu0 %v447_v34, %s2307_s8  ;;  %v782_v49 = vrot.slane %v776_v41, 3  ;;  %v784_v50 = vrot.slane %v777_v42, 3  ;;  %v861_v51 = vmul.f32 %v858_v43, %v2503_v4  ;;  %v1011_v52 = vstv %s2529_s14  ;;  %s1972_s14 = sld [smem:[#allocation7 + $0xd]] }
  0x55   : > { %v698_v53 = vsel %vm590_vm2, %v696_v45, %v697_v38  ;;  %v781_v54 = vrot.slane %v775_v46, 3  ;;  %v859_v55 = vmul.f32 %v858_v43, %v2497_v1  ;;  %v1013_v56 = vmul.f32 %v1011_v52, %v2500_v2 }
  0x56   : > { %v1014_v57 = vmul.f32 %v1011_v52, %v2503_v4  ;;  %v785_v58 = vsel %vm738_vm3, %v782_v49, %v784_v50  ;;  %v866_v59 = vrot.slane %v860_v48, 3  ;;  %v868_v60 = vrot.slane %v861_v51, 3 }
  0x57   : > { %619 = vrot.lane.b32.xlu1 %v616_v40, %s2308_s16  ;;  %v1096_v61 = vstv %s1998_s15  ;;  %v783_v62 = vsel %vm738_vm3, %v781_v54, %v782_v49  ;;  %v865_v63 = vrot.slane %v859_v55, 3  ;;  %v1012_v0 = vmul.f32 %v1011_v52, %v2497_v1  ;;  %s2312_s15 = smov 124  }
  0x58   : > { %617 = vrot.lane.b32.xlu0 %v614_v44, %s2308_s16  ;;  %v1020_v3 = vrot.slane %v1013_v56, 5  ;;  %v1022_v5 = vrot.slane %v1014_v57, 5  ;;  %v869_v6 = vsel %vm738_vm3, %v866_v59, %v868_v60  ;;  %v1098_v7 = vmul.f32 %v1096_v61, %v2500_v2 }
  0x59   : > { %v1099_v8 = vmul.f32 %v1096_v61, %v2503_v4  ;;  %v1181_v9 = vstv %s2002_s13  ;;  %v867_v10 = vsel %vm738_vm3, %v865_v63, %v866_v59  ;;  %v1019_v11 = vrot.slane %v1012_v0, 5  ;;  %s1976_s13 = sld [smem:[#allocation7 + $0x11]] }
  0x5a   : > { %v1097_v12 = vmul.f32 %v1096_v61, %v2497_v1  ;;  %v1023_v13 = vsel %vm1018_vm4, %v1020_v3, %v1022_v5  ;;  %v1265_v14 = vstv %s2006_s27  ;;  %v1104_v15 = vrot.slane %v1098_v7, 5  ;;  %s1977_s27 = sld [smem:[#allocation7 + $0x12]] }
  0x5b   : > { %703 = vrot.lane.b32.xlu1 %v700_v47, %s2309_s18  ;;  %v1106_v16 = vrot.slane %v1099_v8, 5  ;;  %v1183_v17 = vmul.f32 %v1181_v9, %v2500_v2  ;;  %v1184_v18 = vmul.f32 %v1181_v9, %v2503_v4  ;;  %v1021_v19 = vsel %vm1018_vm4, %v1019_v11, %v1020_v3 }
  0x5c   : > { %701 = vrot.lane.b32.xlu0 %v698_v53, %s2309_s18  ;;  %v1103_v20 = vrot.slane %v1097_v12, 5  ;;  %v1182_v21 = vmul.f32 %v1181_v9, %v2497_v1  ;;  %v1267_v22 = vmul.f32 %v1265_v14, %v2500_v2  ;;  %v1268_v26 = vmul.f32 %v1265_v14, %v2503_v4 }
  0x5d   : > { %v1107_v23 = vsel %vm1018_vm4, %v1104_v15, %v1106_v16  ;;  %v1189_v24 = vrot.slane %v1183_v17, 6  ;;  %v1191_v25 = vrot.slane %v1184_v18, 6  ;;  %v1266_v29 = vmul.f32 %v1265_v14, %v2497_v1 }
  0x5e   : > { %v1105_v27 = vsel %vm1018_vm4, %v1103_v20, %v1104_v15  ;;  %v1188_v28 = vrot.slane %v1182_v21, 6  ;;  %v1273_v31 = vrot.slane %v1267_v22, 6  ;;  %v1275_v32 = vrot.slane %v1268_v26, 6 }
  0x5f   : > { %788 = vrot.lane.b32.xlu1 %v785_v58, %s2310_s7  ;;  %v1192_v30 = vsel %vm1166_vm5, %v1189_v24, %v1191_v25  ;;  %v1272_v34 = vrot.slane %v1266_v29, 6  ;;  %v407_v36 = vstv %s2578_s26  ;;  %v478_v37 = vstv %s1968_s12  ;;  %s1980_s26 = sld [smem:[#allocation7 + $0x15]] }
  0x60   : > { %786 = vrot.lane.b32.xlu0 %v783_v62, %s2310_s7  ;;  %v1190_v33 = vsel %vm1166_vm5, %v1188_v28, %v1189_v24  ;;  %v1276_v35 = vsel %vm1166_vm5, %v1273_v31, %v1275_v32  ;;  %v409_v39 = vmul.f32 %v407_v36, %v2500_v2  ;;  %v421_v40 = vstv %s2584_s3  ;;  %s1981_s12 = sld [smem:[#allocation7 + $0x16]]  ;;  %s2313_s3 = smov 123  }
  0x61   : > { %v1274_v38 = vsel %vm1166_vm5, %v1272_v34, %v1273_v31  ;;  %v480_v41 = vmul.f32 %v478_v37, %v2500_v2  ;;  %v481_v42 = vmul.f32 %v478_v37, %v2503_v4  ;;  %v499_v43 = vstv %s1969_s21  ;;  %s1984_s21 = sld [smem:[#allocation7 + $0x19]] }
  0x62   : > { %v408_v44 = vmul.f32 %v407_v36, %v2497_v1  ;;  %v479_v45 = vmul.f32 %v478_v37, %v2497_v1  ;;  %v423_v46 = vmul.f32 %v421_v40, %v2500_v2  ;;  %v501_v47 = vmul.f32 %v499_v43, %v2500_v2 }
  0x63   : > { %872 = vrot.lane.b32.xlu1 %v869_v6, %s2311_s28  ;;  %v486_v48 = vrot.slane %v480_v41, 1  ;;  %v488_v49 = vrot.slane %v481_v42, 1  ;;  %v502_v50 = vmul.f32 %v499_v43, %v2503_v4  ;;  %v562_v51 = vstv %s1972_s14  ;;  %s1985_s14 = sld [smem:[#allocation7 + $0x1a]] }
  0x64   : > { %870 = vrot.lane.b32.xlu0 %v867_v10, %s2311_s28  ;;  %v422_v52 = vmul.f32 %v421_v40, %v2497_v1  ;;  %v485_v53 = vrot.slane %v479_v45, 1  ;;  %v500_v54 = vmul.f32 %v499_v43, %v2497_v1  ;;  %v564_v55 = vmul.f32 %v562_v51, %v2500_v2 }
  0x65   : > { %v565_v56 = vmul.f32 %v562_v51, %v2503_v4  ;;  %v489_v57 = vsel %vm442_vm0, %v486_v48, %v488_v49  ;;  %v507_v58 = vrot.slane %v501_v47, 1  ;;  %v509_v59 = vrot.slane %v502_v50, 1 }
  0x66   : > { %v487_v61 = vsel %vm442_vm0, %v485_v53, %v486_v48  ;;  %v506_v62 = vrot.slane %v500_v54, 1  ;;  %v563_v63 = vmul.f32 %v562_v51, %v2497_v1  ;;  %v570_v0 = vrot.slane %v564_v55, 1 }
  0x67   : > { %1026 = vrot.lane.b32.xlu1 %v1023_v13, %s2307_s8  ;;  %v572_v3 = vrot.slane %v565_v56, 1  ;;  %v510_v5 = vsel %vm442_vm0, %v507_v58, %v509_v59  ;;  %v647_v8 = vstv %s1976_s13  ;;  %v668_v13 = vstv %s1977_s27  ;;  %s1993_s13 = sld [smem:[#allocation7 + $0x22]] }
  0x68   : > { %1024 = vrot.lane.b32.xlu0 %v1021_v19, %s2307_s8  ;;  %s1973_s8 = sld [smem:[#allocation7 + $0xe]]  ;;  %v508_v9 = vsel %vm442_vm0, %v506_v62, %v507_v58  ;;  %v569_v10 = vrot.slane %v563_v63, 1  ;;  %v649_v16 = vmul.f32 %v647_v8, %v2500_v2  ;;  %v650_v17 = vmul.f32 %v647_v8, %v2503_v4 }
  0x69   : > { %v573_v12 = vsel %vm442_vm0, %v570_v0, %v572_v3  ;;  %v648_v20 = vmul.f32 %v647_v8, %v2497_v1  ;;  %v670_v21 = vmul.f32 %v668_v13, %v2500_v2  ;;  %v731_v22 = vstv %s1980_s26  ;;  %s1996_s27 = sld [smem:[#allocation7 + $0x25]] }
  0x6a   : > { %v571_v18 = vsel %vm442_vm0, %v569_v10, %v570_v0  ;;  %v655_v24 = vrot.slane %v649_v16, 2  ;;  %v657_v25 = vrot.slane %v650_v17, 2  ;;  %v671_v26 = vmul.f32 %v668_v13, %v2503_v4  ;;  %s1997_s26 = sld [smem:[#allocation7 + $0x26]] }
  0x6b   : > { %1110 = vrot.lane.b32.xlu1 %v1107_v23, %s2306_s29  ;;  %v654_v28 = vrot.slane %v648_v20, 2  ;;  %v669_v29 = vmul.f32 %v668_v13, %v2497_v1  ;;  %v734_v31 = vmul.f32 %v731_v22, %v2503_v4  ;;  %v837_v49 = vstv %s1985_s14  ;;  %s2749_s14 = sld [smem:[#allocation7 + $0x2]] }
  0x6c   : > { %1108 = vrot.lane.b32.xlu0 %v1105_v27, %s2306_s29  ;;  %v658_v32 = vsel %vm590_vm2, %v655_v24, %v657_v25  ;;  %v678_v34 = vrot.slane %v671_v26, 2  ;;  %v840_v62 = vmul.f32 %v837_v49, %v2503_v4  ;;  %v838_v3 = vmul.f32 %v837_v49, %v2497_v1 }
  0x6d   : > { %v656_v36 = vsel %vm590_vm2, %v654_v28, %v655_v24  ;;  %v675_v37 = vrot.slane %v669_v29, 2  ;;  %v742_v40 = vrot.slane %v734_v31, 3  ;;  %v990_v10 = vstv %s1993_s13  ;;  %s2005_s13 = sld [smem:[#allocation7 + $0x2e]] }
  0x6e   : > { %v583_v60 = vstv %s1973_s8  ;;  %s1992_s8 = sld [smem:[#allocation7 + $0x21]]  ;;  %v992_v17 = vmul.f32 %v990_v10, %v2500_v2 }
  0x6f   : > { %1195 = vrot.lane.b32.xlu1 %v1192_v30, %s2308_s16  ;;  %v585_v6 = vmul.f32 %v583_v60, %v2500_v2  ;;  %v586_v7 = vmul.f32 %v583_v60, %v2503_v4  ;;  %v584_v11 = vmul.f32 %v583_v60, %v2497_v1  ;;  %v733_v30 = vmul.f32 %v731_v22, %v2500_v2 }
  0x70   : > { %1193 = vrot.lane.b32.xlu0 %v1190_v33, %s2308_s16  ;;  %v676_v33 = vrot.slane %v670_v21, 2  ;;  %v1075_v24 = vstv %s1997_s26  ;;  %v998_v25 = vrot.slane %v992_v17, 4  ;;  %s1967_s26 = sld [smem:[#allocation7 + $0x8]] }
  0x71   : > { %v592_v14 = vrot.slane %v585_v6, 2  ;;  %v594_v15 = vrot.slane %v586_v7, 2  ;;  %v591_v19 = vrot.slane %v584_v11, 2 }
  0x72   : > { %v679_v41 = vsel %vm590_vm2, %v676_v33, %v678_v34  ;;  %v677_v45 = vsel %vm590_vm2, %v675_v37, %v676_v33  ;;  %v1078_v33 = vmul.f32 %v1075_v24, %v2503_v4 }
  0x73   : > { %1279 = vrot.lane.b32.xlu1 %v1276_v35, %s2309_s18  ;;  %v595_v23 = vsel %vm590_vm2, %v592_v14, %v594_v15  ;;  %v593_v27 = vsel %vm590_vm2, %v591_v19, %v592_v14  ;;  %v753_v35 = vstv %s1981_s12  ;;  %v1054_v19 = vstv %s1996_s27  ;;  %s2001_s12 = sld [smem:[#allocation7 + $0x2a]] }
  0x74   : > { %1277 = vrot.lane.b32.xlu0 %v1274_v38, %s2309_s18  ;;  %v732_v38 = vmul.f32 %v731_v22, %v2497_v1  ;;  %v755_v42 = vmul.f32 %v753_v35, %v2500_v2  ;;  %v756_v43 = vmul.f32 %v753_v35, %v2503_v4  ;;  %v754_v47 = vmul.f32 %v753_v35, %v2497_v1  ;;  %s1962_s27 = sld [smem:[#allocation7 + $0x3]] }
  0x75   : > { %v969_v58 = vstv %s1992_s8  ;;  %v991_v22 = vmul.f32 %v990_v10, %v2497_v1  ;;  %v1057_v28 = vmul.f32 %v1054_v19, %v2503_v4  ;;  %v1055_v31 = vmul.f32 %v1054_v19, %v2497_v1  ;;  %s1979_s8 = sld [smem:[#allocation7 + $0x14]] }
  0x76   : > { %v761_v50 = vrot.slane %v755_v42, 3  ;;  %v763_v51 = vrot.slane %v756_v43, 3  ;;  %v760_v55 = vrot.slane %v754_v47, 3  ;;  %v972_v6 = vmul.f32 %v969_v58, %v2503_v4  ;;  %v2700_v47 = vld [vmem:[%s3018_s4] sm:$0xff] }
  0x77   : > { %414 = vrot.lane.b32.xlu1 %v409_v39, %s2312_s15  ;;  %v740_v39 = vrot.slane %v733_v30, 3  ;;  %v970_v13 = vmul.f32 %v969_v58, %v2497_v1  ;;  %v997_v30 = vrot.slane %v991_v22, 4  ;;  %v1085_v42 = vrot.slane %v1078_v33, 5  ;;  %2057 = vmatprep.mubr.msk.f32.mxu1 %vm1358_vm1, %v2700_v47 }
  0x78   : > { %412 = vrot.lane.b32.xlu0 %v408_v44, %s2312_s15  ;;  %v816_v44 = vstv %s1984_s21  ;;  %v764_v59 = vsel %vm738_vm3, %v761_v50, %v763_v51  ;;  %v762_v63 = vsel %vm738_vm3, %v760_v55, %v761_v50  ;;  %v979_v15 = vrot.slane %v972_v6, 4  ;;  %s2004_s21 = sld [smem:[#allocation7 + $0x2d]]  ;;  %2067 = vmatprep.mubr.msk.f32.mxu0 %vm1358_vm1, %v2700_v47 }
  0x79   : > { %v743_v48 = vsel %vm738_vm3, %v740_v39, %v742_v40  ;;  %v819_v53 = vmul.f32 %v816_v44, %v2503_v4  ;;  %v817_v56 = vmul.f32 %v816_v44, %v2497_v1  ;;  %v976_v21 = vrot.slane %v970_v13, 4 }
  0x7a   : > { %v1076_v40 = vmul.f32 %v1075_v24, %v2497_v1 }
  0x7b   : > { %428 = vrot.lane.b32.xlu1 %v423_v46, %s2312_s15  ;;  %v739_v46 = vrot.slane %v732_v38, 3  ;;  %v823_v0 = vrot.slane %v817_v56, 3  ;;  %v999_v38 = vsel %vm886_vm6, %v997_v30, %v998_v25 }
  0x7c   : > { %426 = vrot.lane.b32.xlu0 %v422_v52, %s2312_s15  ;;  %v818_v52 = vmul.f32 %v816_v44, %v2500_v2 }
  0x7d   : > { %v741_v54 = vsel %vm738_vm3, %v739_v46, %v740_v39  ;;  %v1061_v39 = vrot.slane %v1055_v31, 5  ;;  %v1159_v46 = vstv %s2001_s12  ;;  %s1971_s12 = sld [smem:[#allocation7 + $0xc]] }
  0x7e   : > { %v824_v60 = vrot.slane %v818_v52, 3  ;;  %v1161_v51 = vmul.f32 %v1159_v46, %v2500_v2  ;;  %v1162_v52 = vmul.f32 %v1159_v46, %v2503_v4  ;;  %v1223_v56 = vstv %s2004_s21  ;;  %s1975_s21 = sld [smem:[#allocation7 + $0x10]] }
  0x7f   : > { %492 = vrot.lane.b32.xlu1 %v489_v57, %s2306_s29  ;;  %v839_v57 = vmul.f32 %v837_v49, %v2500_v2  ;;  %v1082_v49 = vrot.slane %v1076_v40, 5 }
  0x80   : > { %490 = vrot.lane.b32.xlu0 %v487_v61, %s2306_s29  ;;  %v826_v61 = vrot.slane %v819_v53, 3  ;;  %v825_v11 = vsel %vm738_vm3, %v823_v0, %v824_v60  ;;  %v1226_v0 = vmul.f32 %v1223_v56, %v2503_v4 }
  0x81   : > { %v845_v8 = vrot.slane %v839_v57, 3 }
  0x82   : > { %v827_v7 = vsel %vm738_vm3, %v824_v60, %v826_v61  ;;  %v1168_v60 = vrot.slane %v1161_v51, 6  ;;  %v1170_v61 = vrot.slane %v1162_v52, 6 }
  0x83   : > { %513 = vrot.lane.b32.xlu1 %v510_v5, %s2306_s29  ;;  %v971_v5 = vmul.f32 %v969_v58, %v2500_v2 }
  0x84   : > { %511 = vrot.lane.b32.xlu0 %v508_v9, %s2306_s29  ;;  %v847_v9 = vrot.slane %v840_v62, 3 }
  0x85   : > { %v977_v14 = vrot.slane %v971_v5, 4 }
  0x86   : > { %v848_v16 = vsel %vm738_vm3, %v845_v8, %v847_v9 }
  0x87   : > { %576 = vrot.lane.b32.xlu1 %v573_v12, %s2313_s3  ;;  %v844_v12 = vrot.slane %v838_v3, 3  ;;  %v978_v29 = vsel %vm886_vm6, %v976_v21, %v977_v14  ;;  %v1244_v3 = vstv %s2005_s13  ;;  %s2761_s13 = sld [smem:[#allocation7 + $0x18]] }
  0x88   : > { %574 = vrot.lane.b32.xlu0 %v571_v18, %s2313_s3  ;;  %v993_v18 = vmul.f32 %v990_v10, %v2503_v4  ;;  %v1233_v10 = vrot.slane %v1226_v0, 6 }
  0x89   : > { %v846_v20 = vsel %vm738_vm3, %v844_v12, %v845_v8  ;;  %v1171_v8 = vsel %vm1166_vm5, %v1168_v60, %v1170_v61  ;;  %v1247_v12 = vmul.f32 %v1244_v3, %v2503_v4 }
  0x8a   : > { %v1000_v26 = vrot.slane %v993_v18, 4 }
  0x8b   : > { %598 = vrot.lane.b32.xlu1 %v595_v23, %s2308_s16  ;;  %v980_v23 = vsel %vm886_vm6, %v977_v14, %v979_v15  ;;  %v1245_v15 = vmul.f32 %v1244_v3, %v2497_v1  ;;  %v1254_v18 = vrot.slane %v1247_v12, 6 }
  0x8c   : > { %596 = vrot.lane.b32.xlu0 %v593_v27, %s2308_s16  ;;  %v1056_v27 = vmul.f32 %v1054_v19, %v2500_v2  ;;  %v1001_v34 = vsel %vm886_vm6, %v998_v25, %v1000_v26  ;;  %v387_v25 = vstv %s1962_s27  ;;  %s2775_s27 = sld [smem:[#allocation7 + $0x20]] }
  0x8d   : > { %v388_v30 = vmul.f32 %v387_v25, %v2497_v1 }
  0x8e   : > { %v1062_v35 = vrot.slane %v1056_v27, 5  ;;  %v389_v27 = vmul.f32 %v387_v25, %v2500_v2 }
  0x8f   : > { %661 = vrot.lane.b32.xlu1 %v658_v32, %s2309_s18  ;;  %v1077_v32 = vmul.f32 %v1075_v24, %v2500_v2 }
  0x90   : > { %659 = vrot.lane.b32.xlu0 %v656_v36, %s2309_s18  ;;  %v1064_v36 = vrot.slane %v1057_v28, 5 }
  0x92   : > { %v1065_v43 = vsel %vm1018_vm4, %v1062_v35, %v1064_v36 }
  0x93   : > { %682 = vrot.lane.b32.xlu1 %v679_v41, %s2309_s18  ;;  %v1083_v41 = vrot.slane %v1077_v32, 5 }
  0x94   : > { %680 = vrot.lane.b32.xlu0 %v677_v45, %s2309_s18 }
  0x95   : > { %v1086_v53 = vsel %vm1018_vm4, %v1083_v41, %v1085_v42  ;;  %v1084_v57 = vsel %vm1018_vm4, %v1082_v49, %v1083_v41 }
  0x97   : > { %746 = vrot.lane.b32.xlu1 %v743_v48, %s2310_s7  ;;  %v1063_v48 = vsel %vm1018_vm4, %v1061_v39, %v1062_v35 }
  0x98   : > { %744 = vrot.lane.b32.xlu0 %v741_v54, %s2310_s7 }
  0x9b   : > { %767 = vrot.lane.b32.xlu1 %v764_v59, %s2310_s7  ;;  %v1160_v59 = vmul.f32 %v1159_v46, %v2497_v1 }
  0x9c   : > { %765 = vrot.lane.b32.xlu0 %v762_v63, %s2310_s7  ;;  %s2000_s7 = sld [smem:[#allocation7 + $0x29]]  ;;  %v1225_v63 = vmul.f32 %v1223_v56, %v2500_v2 }
  0x9d   : > { %v1167_v6 = vrot.slane %v1160_v59, 6 }
  0x9e   : > { %v1231_v9 = vrot.slane %v1225_v63, 6 }
  0x9f   : > { %830 = vrot.lane.b32.xlu1 %v827_v7, %s2311_s28  ;;  %v1224_v7 = vmul.f32 %v1223_v56, %v2497_v1  ;;  %v1169_v13 = vsel %vm1166_vm5, %v1167_v6, %v1168_v60 }
  0xa0   : > { %828 = vrot.lane.b32.xlu0 %v825_v11, %s2311_s28  ;;  %v1246_v11 = vmul.f32 %v1244_v3, %v2500_v2 }
  0xa1   : > { %v1230_v14 = vrot.slane %v1224_v7, 6 }
  0xa2   : > { %v1138_v37 = vstv %s2000_s7  ;;  %v1252_v17 = vrot.slane %v1246_v11, 6  ;;  %s2747_s7 = sld [smem:[#allocation7 + $0x4]] }
  0xa3   : > { %851 = vrot.lane.b32.xlu1 %v848_v16, %s2311_s28  ;;  %v1140_v44 = vmul.f32 %v1138_v37, %v2500_v2  ;;  %v1141_v45 = vmul.f32 %v1138_v37, %v2503_v4  ;;  %v1139_v50 = vmul.f32 %v1138_v37, %v2497_v1  ;;  %v1234_v16 = vsel %vm1166_vm5, %v1231_v9, %v1233_v10 }
  0xa4   : > { %849 = vrot.lane.b32.xlu0 %v846_v20, %s2311_s28  ;;  %v1232_v19 = vsel %vm1166_vm5, %v1230_v14, %v1231_v9  ;;  %v1251_v20 = vrot.slane %v1245_v15, 6  ;;  %v1255_v21 = vsel %vm1166_vm5, %v1252_v17, %v1254_v18  ;;  %v457_v9 = vstv %s1967_s26  ;;  %s2800_s26 = sld [smem:[#allocation7 + $0x28]] }
  0xa5   : > { %v1146_v54 = vrot.slane %v1140_v44, 5  ;;  %v1148_v55 = vrot.slane %v1141_v45, 5  ;;  %v1145_v58 = vrot.slane %v1139_v50, 5  ;;  %v459_v15 = vmul.f32 %v457_v9, %v2500_v2 }
  0xa7   : > { %983 = vrot.lane.b32.xlu1 %v980_v23, %s2312_s15  ;;  %v1149_v62 = vsel %vm1018_vm4, %v1146_v54, %v1148_v55  ;;  %v1147_v5 = vsel %vm1018_vm4, %v1145_v58, %v1146_v54  ;;  %v1253_v23 = vsel %vm1166_vm5, %v1251_v20, %v1252_v17  ;;  %v541_v17 = vstv %s1971_s12  ;;  %s2314_s12 = smov 122  }
  0xa8   : > { %981 = vrot.lane.b32.xlu0 %v978_v29, %s2312_s15  ;;  %v393_v14 = vstv %s2747_s7  ;;  %v544_v25 = vmul.f32 %v541_v17, %v2503_v4  ;;  %s2812_s7 = sld [smem:[#allocation7 + $0x2c]] }
  0xab   : > { %1004 = vrot.lane.b32.xlu1 %v1001_v34, %s2312_s15 }
  0xac   : > { %1002 = vrot.lane.b32.xlu0 %v999_v38, %s2312_s15 }
  0xaf   : > { %1068 = vrot.lane.b32.xlu1 %v1065_v43, %s2306_s29 }
  0xb0   : > { %1066 = vrot.lane.b32.xlu0 %v1063_v48, %s2306_s29 }
  0xb3   : > { %1089 = vrot.lane.b32.xlu1 %v1086_v53, %s2306_s29 }
  0xb4   : > { %1087 = vrot.lane.b32.xlu0 %v1084_v57, %s2306_s29 }
  0xb7   : > { %1152 = vrot.lane.b32.xlu1 %v1149_v62, %s2313_s3 }
  0xb8   : > { %1150 = vrot.lane.b32.xlu0 %v1147_v5, %s2313_s3 }
  0xbb   : > { %1174 = vrot.lane.b32.xlu1 %v1171_v8, %s2308_s16 }
  0xbc   : > { %1172 = vrot.lane.b32.xlu0 %v1169_v13, %s2308_s16  ;;  %s1990_s16 = sld [smem:[#allocation7 + $0x1f]] }
  0xbf   : > { %1237 = vrot.lane.b32.xlu1 %v1234_v16, %s2309_s18  ;;  %v460_v16 = vmul.f32 %v457_v9, %v2503_v4 }
  0xc0   : > { %1235 = vrot.lane.b32.xlu0 %v1232_v19, %s2309_s18 }
  0xc1   : > { %v533_v22 = vpop.permute.xlu1 %532 }
  0xc2   : > { %v449_v24 = vpop.permute.xlu0 %448  ;;  %v931_v36 = vstv %s1990_s16  ;;  %s2787_s16 = sld [smem:[#allocation7 + $0x24]] }
  0xc3   : > { %1258 = vrot.lane.b32.xlu1 %v1255_v21, %s2309_s18  ;;  %v454_v34 = vadd.f32 %v449_v24, %v388_v30  ;;  %v933_v39 = vmul.f32 %v931_v36, %v2500_v2  ;;  %v934_v40 = vmul.f32 %v931_v36, %v2503_v4  ;;  %v932_v44 = vmul.f32 %v931_v36, %v2497_v1 }
  0xc4   : > { %1256 = vrot.lane.b32.xlu0 %v1253_v23, %s2309_s18  ;;  %v458_v21 = vmul.f32 %v457_v9, %v2497_v1  ;;  %v395_v23 = vmul.f32 %v393_v14, %v2500_v2  ;;  %v543_v24 = vmul.f32 %v541_v17, %v2500_v2  ;;  %v626_v30 = vstv %s1975_s21  ;;  %s2007_s21 = sld [smem:[#allocation7 + $0x30]] }
  0xc5   : > { %v535_v26 = vpop.permute.xlu1 %534  ;;  %v538_v42 = vadd.f32 %v533_v22, %v454_v34  ;;  %v939_v49 = vrot.slane %v933_v39, 4  ;;  %v941_v50 = vrot.slane %v934_v40, 4  ;;  %v938_v54 = vrot.slane %v932_v44, 4 }
  0xc6   : > { %v451_v28 = vpop.permute.xlu0 %450  ;;  %v542_v34 = vmul.f32 %v541_v17, %v2497_v1  ;;  %v551_v36 = vrot.slane %v544_v25, 1  ;;  %v628_v39 = vmul.f32 %v626_v30, %v2500_v2  ;;  %v629_v40 = vmul.f32 %v626_v30, %v2503_v4  ;;  %v2827_v25 = vld [vmem:[%s2494_s30 + $0x10] sm:$0x3f] }
  0xc7   : > { %v455_v31 = vadd.f32 %v451_v28, %v389_v27  ;;  %v942_v57 = vsel %vm886_vm6, %v939_v49, %v941_v50  ;;  %v940_v60 = vsel %vm886_vm6, %v938_v54, %v939_v49  ;;  %v465_v27 = vrot.slane %v459_v15, 1 }
  0xc8   : > { %v467_v28 = vrot.slane %v460_v16, 1  ;;  %v636_v54 = vrot.slane %v629_v40, 2 }
  0xc9   : > { %v620_v29 = vpop.permute.xlu1 %619  ;;  %v539_v35 = vadd.f32 %v535_v26, %v455_v31 }
  0xca   : > { %v618_v32 = vpop.permute.xlu0 %617 }
  0xcb   : > { %v624_v41 = vadd.f32 %v620_v29, %v539_v35  ;;  %v623_v45 = vadd.f32 %v618_v32, %v538_v42  ;;  %v394_v29 = vmul.f32 %v393_v14, %v2497_v1  ;;  %v381_v32 = vstv %s2749_s14  ;;  %s1989_s14 = sld [smem:[#allocation7 + $0x1e]] }
  0xcc   : > { %v549_v35 = vrot.slane %v543_v24, 1  ;;  %v383_v42 = vmul.f32 %v381_v32, %v2500_v2 }
  0xcd   : > { %v704_v33 = vpop.permute.xlu1 %703 }
  0xce   : > { %v702_v37 = vpop.permute.xlu0 %701  ;;  %v708_v46 = vadd.f32 %v704_v33, %v624_v41  ;;  %v464_v33 = vrot.slane %v458_v21, 1  ;;  %v710_v41 = vstv %s1979_s8  ;;  %s1987_s8 = sld [smem:[#allocation7 + $0x1c]] }
  0xcf   : > { %v707_v51 = vadd.f32 %v702_v37, %v623_v45  ;;  %v548_v45 = vrot.slane %v542_v34, 1  ;;  %v712_v49 = vmul.f32 %v710_v41, %v2500_v2  ;;  %v713_v50 = vmul.f32 %v710_v41, %v2503_v4 }
  0xd0   : > { %v466_v44 = vsel %vm442_vm0, %v464_v33, %v465_v27  ;;  %v1117_v34 = vstv %s2800_s26 }
  0xd1   : > { %v789_v38 = vpop.permute.xlu1 %788 }
  0xd2   : > { %v787_v43 = vpop.permute.xlu0 %786  ;;  %v793_v52 = vadd.f32 %v789_v38, %v708_v46  ;;  %v468_v38 = vsel %vm442_vm0, %v465_v27, %v467_v28  ;;  %v627_v46 = vmul.f32 %v626_v30, %v2497_v1 }
  0xd3   : > { %v792_v55 = vadd.f32 %v787_v43, %v707_v51 }
  0xd5   : > { %v873_v48 = vpop.permute.xlu1 %872 }
  0xd6   : > { %v871_v53 = vpop.permute.xlu0 %870  ;;  %v877_v56 = vadd.f32 %v873_v48, %v793_v52  ;;  %v382_v48 = vmul.f32 %v381_v32, %v2497_v1  ;;  %v552_v52 = vsel %vm442_vm0, %v549_v35, %v551_v36 }
  0xd7   : > { %v876_v59 = vadd.f32 %v871_v53, %v792_v55  ;;  %v634_v53 = vrot.slane %v628_v39, 2  ;;  %v795_v55 = vstv %s2761_s13  ;;  %s343_s13 = scalar_lea.vmem [#allocation8], %s1954_s11 }
  0xd8   : > { %v946_v62 = vadd.f32 %v942_v57, %v877_v56 }
  0xd9   : > { %v1027_v58 = vpop.permute.xlu1 %1026  ;;  %v945_v0 = vadd.f32 %v940_v60, %v876_v59  ;;  %v633_v59 = vrot.slane %v627_v46, 2  ;;  %v711_v60 = vmul.f32 %v710_v41, %v2497_v1  ;;  %v1202_v46 = vstv %s2812_s7  ;;  %s2315_s7 = smov [#allocation8]  }
  0xda   : > { %v1025_v61 = vpop.permute.xlu0 %1024  ;;  %v1031_v5 = vadd.f32 %v1027_v58, %v946_v62  ;;  %v550_v58 = vsel %vm442_vm0, %v548_v45, %v549_v35  ;;  %v718_v62 = vrot.slane %v712_v49, 2  ;;  %v1120_v45 = vmul.f32 %v2827_v25, %v1117_v34 }
  0xdb   : > { %v1030_v7 = vadd.f32 %v1025_v61, %v945_v0  ;;  %v797_v0 = vmul.f32 %v795_v55, %v2500_v2 }
  0xdd   : > { %v1111_v63 = vpop.permute.xlu1 %1110  ;;  %v803_v15 = vrot.slane %v797_v0, 3 }
  0xde   : > { %v1109_v3 = vpop.permute.xlu0 %1108  ;;  %v1115_v8 = vadd.f32 %v1111_v63, %v1031_v5  ;;  %v720_v63 = vrot.slane %v713_v50, 2  ;;  %v637_v5 = vsel %vm590_vm2, %v634_v53, %v636_v54 }
  0xdf   : > { %v1114_v11 = vadd.f32 %v1109_v3, %v1030_v7 }
  0xe0   : > { %v721_v14 = vsel %vm590_vm2, %v718_v62, %v720_v63 }
  0xe1   : > { %v1196_v6 = vpop.permute.xlu1 %1195 }
  0xe2   : > { %v1194_v10 = vpop.permute.xlu0 %1193  ;;  %v1200_v12 = vadd.f32 %v1196_v6, %v1115_v8  ;;  %v798_v6 = vmul.f32 %v795_v55, %v2503_v4  ;;  %v948_v8 = vstv %s2775_s27  ;;  %s1816_s27 = sshll.u32 %s343_s13, 4  ;;  %s2960_s27 = int_to_ptr.vmem [resolvable:$true] %s1816_s27 }
  0xe3   : > { %v1199_v18 = vadd.f32 %v1194_v10, %v1114_v11  ;;  %v635_v10 = vsel %vm590_vm2, %v633_v59, %v634_v53  ;;  %v717_v11 = vrot.slane %v711_v60, 2  ;;  %v1205_v59 = vmul.f32 %v2827_v25, %v1202_v46  ;;  %s2216_s26 = scalar_lea.vmem %s2960_s27, 1024 }
  0xe4   : > { %v805_v17 = vrot.slane %v798_v6, 3  ;;  %p2217_p3 = scmp.ne.s32.totalorder %s2960_s27, %s2216_s26 }
  0xe5   : > { %v1280_v13 = vpop.permute.xlu1 %1279  ;;  %v719_v21 = vsel %vm590_vm2, %v717_v11, %v718_v62 }
  0xe6   : > { %v1284_v19 = vadd.f32 %v1280_v13, %v1200_v12  ;;  %v1278_v20 = vpop.permute.xlu0 %1277  ;;  %v796_v12 = vmul.f32 %v795_v55, %v2497_v1  ;;  %p2218_p2 = pnand %p2217_p3, %p3041_p7 }
  0xe7   : > { %v1283_v22 = vadd.f32 %v1278_v20, %v1199_v18  ;;  %v950_v18 = vmul.f32 %v948_v8, %v2500_v2  ;;  %v1033_v20 = vstv %s2787_s16  ;;  %v2823_v2 = vld [vmem:[%s2494_s30 + $0x8] sm:$0xff]  ;;  %s1800_s16 = scalar_lea.sflag [#allocation5], %s2470_s19 }
  0xe8   : > { %1320 = vrot.lane.b32.xlu1 %v1284_v19, %s2306_s29  ;;  %v951_v19 = vmul.f32 %v948_v8, %v2503_v4  ;;  %v1035_v4 = vmul.f32 %v2823_v2, %v1033_v20  ;;  %v1036_v27 = vmul.f32 %v2827_v25, %v1033_v20  ;;  %p2219_p1 = pneg %p2218_p2 }
  0xe9   : > { %v2759_v26 = vpop.permute.xlu1 %414  ;;  %1318 = vrot.lane.b32.xlu0 %v1283_v22, %s2306_s29  ;;  %v802_v22 = vrot.slane %v796_v12, 3  ;;  %v956_v30 = vrot.slane %v950_v18, 4 }
  0xea   : > { %v2765_v31 = vpop.permute.xlu0 %412  ;;  %v958_v32 = vrot.slane %v951_v19, 4  ;;  %v1041_v40 = vrot.slane %v1035_v4, 5  ;;  %v1043_v41 = vrot.slane %v1036_v27, 5 }
  0xeb   : > { %v804_v36 = vsel %vm738_vm3, %v802_v22, %v803_v15 }
  0xec   : > { %400 = vrot.lane.b32.xlu1 %v395_v23, %s2312_s15  ;;  %v2818_v23 = vld [vmem:[%s2494_s30] sm:$0xff]  ;;  %s2835_s30 = sld [smem:[#allocation7 + $0x1]]  ;;  %v1044_v53 = vsel %vm1018_vm4, %v1041_v40, %v1043_v41 }
  0xed   : > { %v429_v37 = vpop.permute.xlu1 %428  ;;  %398 = vrot.lane.b32.xlu0 %v394_v29, %s2312_s15  ;;  %v949_v24 = vmul.f32 %v2818_v23, %v948_v8  ;;  %v806_v29 = vsel %vm738_vm3, %v803_v15, %v805_v17  ;;  %v1203_v0 = vmul.f32 %v2818_v23, %v1202_v46 }
  0xee   : > { %v427_v43 = vpop.permute.xlu0 %426  ;;  %v433_v56 = vadd.f32 %v429_v37, %v383_v42 }
  0xef   : > { %v432_v61 = vadd.f32 %v427_v43, %v382_v48  ;;  %v955_v37 = vrot.slane %v949_v24, 4  ;;  %v959_v43 = vsel %vm886_vm6, %v956_v30, %v958_v32 }
  0xf0   : > { %471 = vrot.lane.b32.xlu1 %v468_v38, %s2306_s29  ;;  %v1034_v38 = vmul.f32 %v2818_v23, %v1033_v20 }
  0xf1   : > { %v2783_v51 = vpop.permute.xlu1 %492  ;;  %469 = vrot.lane.b32.xlu0 %v466_v44, %s2306_s29  ;;  %v1119_v44 = vmul.f32 %v2823_v2, %v1117_v34  ;;  %v957_v49 = vsel %vm886_vm6, %v955_v37, %v956_v30 }
  0xf2   : > { %v2790_v57 = vpop.permute.xlu0 %490  ;;  %v1040_v50 = vrot.slane %v1034_v38, 5 }
  0xf3   : > { %v1125_v55 = vrot.slane %v1119_v44, 5 }
  0xf4   : > { %555 = vrot.lane.b32.xlu1 %v552_v52, %s2313_s3  ;;  %v1118_v52 = vmul.f32 %v2818_v23, %v1117_v34  ;;  %v1042_v62 = vsel %vm1018_vm4, %v1040_v50, %v1041_v40 }
  0xf5   : > { %v514_v3 = vpop.permute.xlu1 %513  ;;  %553 = vrot.lane.b32.xlu0 %v550_v58, %s2313_s3  ;;  %v1204_v58 = vmul.f32 %v2823_v2, %v1202_v46 }
  0xf6   : > { %v518_v7 = vadd.f32 %v514_v3, %v433_v56  ;;  %v512_v9 = vpop.permute.xlu0 %511  ;;  %v1127_v56 = vrot.slane %v1120_v45, 5  ;;  %v1124_v63 = vrot.slane %v1118_v52, 5  ;;  %v375_v3 = vstv %s2835_s30 }
  0xf7   : > { %v517_v13 = vadd.f32 %v512_v9, %v432_v61  ;;  %v1210_v8 = vrot.slane %v1204_v58, 6  ;;  %v1212_v9 = vrot.slane %v1205_v59, 6 }
  0xf8   : > { %640 = vrot.lane.b32.xlu1 %v637_v5, %s2309_s18  ;;  %v1126_v12 = vsel %vm1018_vm4, %v1124_v63, %v1125_v55 }
  0xf9   : > { %v2806_v16 = vpop.permute.xlu1 %576  ;;  %638 = vrot.lane.b32.xlu0 %v635_v10, %s2309_s18  ;;  %v1286_v10 = vstv %s2007_s21  ;;  %v1213_v19 = vsel %vm1166_vm5, %v1210_v8, %v1212_v9 }
  0xfa   : > { %v2814_v1 = vpop.permute.xlu0 %574  ;;  %v1288_v15 = vmul.f32 %v2823_v2, %v1286_v10  ;;  %v1289_v17 = vmul.f32 %v2827_v25, %v1286_v10  ;;  %v1287_v20 = vmul.f32 %v2818_v23, %v1286_v10 }
  0xfc   : > { %724 = vrot.lane.b32.xlu1 %v721_v14, %s2314_s12  ;;  %v377_v14 = vmul.f32 %v2823_v2, %v375_v3  ;;  %v1293_v34 = vrot.slane %v1287_v20, 6 }
  0xfd   : > { %v599_v28 = vpop.permute.xlu1 %598  ;;  %722 = vrot.lane.b32.xlu0 %v719_v21, %s2314_s12  ;;  %v376_v21 = vmul.f32 %v2818_v23, %v375_v3 }
  0xfe   : > { %v603_v33 = vadd.f32 %v599_v28, %v518_v7  ;;  %v597_v35 = vpop.permute.xlu0 %596  ;;  %v1128_v7 = vsel %vm1018_vm4, %v1125_v55, %v1127_v56  ;;  %v419_v27 = vadd.f32 %v2759_v26, %v377_v14  ;;  %v1294_v28 = vrot.slane %v1288_v15, 6 }
  0xff   : > { %v602_v39 = vadd.f32 %v597_v35, %v517_v13  ;;  %v1209_v13 = vrot.slane %v1203_v0, 6  ;;  %v418_v35 = vadd.f32 %v2765_v31, %v376_v21 }
 0x100   : > { %809 = vrot.lane.b32.xlu1 %v806_v29, %s2311_s28  ;;  %v1296_v29 = vrot.slane %v1289_v17, 6  ;;  %v497_v37 = vadd.f32 %v2783_v51, %v419_v27  ;;  %v1295_v31 = vsel %vm1166_vm5, %v1293_v34, %v1294_v28 }
 0x101   : > { %v2838_v42 = vpop.permute.xlu1 %661  ;;  %807 = vrot.lane.b32.xlu0 %v804_v36, %s2311_s28  ;;  %v1211_v4 = vsel %vm1166_vm5, %v1209_v13, %v1210_v8  ;;  %v496_v41 = vadd.f32 %v2790_v57, %v418_v35 }
 0x102   : > { %v2845_v48 = vpop.permute.xlu0 %659  ;;  %v1297_v38 = vsel %vm1166_vm5, %v1294_v28, %v1296_v29  ;;  %v581_v51 = vadd.f32 %v2806_v16, %v497_v37  ;;  %v914_v28 = vstv %s1989_s14 }
 0x103   : > { %v580_v57 = vadd.f32 %v2814_v1, %v496_v41  ;;  %v916_v29 = vmul.f32 %v2823_v2, %v914_v28 }
 0x104   : > { %962 = vrot.lane.b32.xlu1 %v959_v43, %s2312_s15 }
 0x105   : > { %v683_v54 = vpop.permute.xlu1 %682  ;;  %960 = vrot.lane.b32.xlu0 %v957_v49, %s2312_s15  ;;  %v666_v49 = vadd.f32 %v2838_v42, %v581_v51  ;;  %v922_v34 = vrot.slane %v916_v29, 4 }
 0x106   : > { %v2853_v60 = vadd.f32 %v683_v54, %v603_v33  ;;  %v681_v61 = vpop.permute.xlu0 %680  ;;  %v1457_v33 = vld [vmem:[%s3018_s4 + $0x8] sm:$0xff] }
 0x107   : > { %v2859_v5 = vadd.f32 %v681_v61, %v602_v39 }
 0x108   : > { %1047 = vrot.lane.b32.xlu1 %v1044_v53, %s2306_s29  ;;  %v665_v53 = vadd.f32 %v2845_v48, %v580_v57 }
 0x109   : > { %v2862_v6 = vpop.permute.xlu1 %746  ;;  %1045 = vrot.lane.b32.xlu0 %v1042_v62, %s2306_s29 }
 0x10a   : > { %v2866_v11 = vpop.permute.xlu0 %744  ;;  %v751_v1 = vadd.f32 %v2862_v6, %v666_v49 }
 0x10b   : > { %v750_v59 = vadd.f32 %v2866_v11, %v665_v53 }
 0x10c   : > { %1131 = vrot.lane.b32.xlu1 %v1128_v7, %s2313_s3  ;;  %v2051_v24 = vpop.f32.mrf.mxu0 }
 0x10d   : > { %v2873_v18 = vpop.permute.xlu1 %767  ;;  %1129 = vrot.lane.b32.xlu0 %v1126_v12, %s2313_s3  ;;  %s1988_s3 = sld [smem:[#allocation7 + $0x1d]] }
 0x10e   : > { %v2879_v22 = vpop.permute.xlu0 %765  ;;  %v1437_v32 = vpop.f32.mrf.mxu0 }
 0x10f   : > { %2055 = vmatprep.subr.mxu1 %v1437_v32 }
 0x110   : > { %1216 = vrot.lane.b32.xlu1 %v1213_v19, %s2309_s18  ;;  %2056 = vmatpush3.msra.mxu1 %v1437_v32  ;;  %v2054_v26 = vpop.f32.mrf.mxu0  ;;  %v915_v32 = vmul.f32 %v2818_v23, %v914_v28 }
 0x111   : > { %v831_v30 = vpop.permute.xlu1 %830  ;;  %1214 = vrot.lane.b32.xlu0 %v1211_v4, %s2309_s18  ;;  %2060 = vmatprep.subr.mxu1 %v2051_v24 }
 0x112   : > { %v829_v36 = vpop.permute.xlu0 %828  ;;  %2058 = vmatmul.mubr.msk.f32.vlgmr.msra.gmra.mxu1 %vm1358_vm1, %v1457_v33  ;;  %v1447_v40 = vpop.f32.mrf.mxu0  ;;  %v835_v62 = vadd.f32 %v831_v30, %v751_v1  ;;  %v917_v30 = vmul.f32 %v2827_v25, %v914_v28 }
 0x113   : > { %2061 = vmatpush3.msra.mxu1 %v2051_v24  ;;  %2062 = vmatprep.mubr.msk.f32.mxu1 %vm1358_vm1, %v2700_v47  ;;  %v897_v45 = vstv %s1988_s3  ;;  %v834_v3 = vadd.f32 %v829_v36, %v750_v59  ;;  %v771_v36 = vadd.f32 %v2879_v22, %v2859_v5 }
 0x114   : > { %2065 = vmatprep.subr.mxu0 %v1447_v40  ;;  %2070 = vmatprep.subr.mxu1 %v2054_v26  ;;  %v899_v16 = vmul.f32 %v2823_v2, %v897_v45  ;;  %v900_v50 = vmul.f32 %v2827_v25, %v897_v45  ;;  %v898_v54 = vmul.f32 %v2818_v23, %v897_v45  ;;  %v924_v35 = vrot.slane %v917_v30, 4 }
 0x115   : > { %v2892_v39 = vpop.permute.xlu1 %851  ;;  %2066 = vmatpush3.msra.mxu0 %v1447_v40  ;;  %1300 = vrot.lane.b32.xlu1 %v1297_v38, %s2314_s12 }
 0x116   : > { %v2898_v43 = vpop.permute.xlu0 %849  ;;  %2063 = vmatmul.mubr.msk.f32.vlgmr.msra.gmra.mxu1 %vm1358_vm1, %v1457_v33  ;;  %1298 = vrot.lane.b32.xlu0 %v1295_v31, %s2314_s12  ;;  %v905_v55 = vrot.slane %v899_v16, 4  ;;  %v907_v56 = vrot.slane %v900_v50, 4  ;;  %v904_v42 = vrot.slane %v898_v54, 4  ;;  %v925_v38 = vsel %vm886_vm6, %v922_v34, %v924_v35  ;;  %s2220_s12 = sshll.u32 %s2315_s7, 4  ;;  %s2221_s12 = int_to_ptr.vmem [resolvable:$false] %s2220_s12 }
 0x117   : > { %2071 = vmatpush3.msra.mxu1 %v2054_v26  ;;  %2072 = vmatprep.mubr.msk.f32.mxu1 %vm1358_vm1, %v2700_v47  ;;  %v921_v26 = vrot.slane %v915_v32, 4  ;;  %v855_v40 = vadd.f32 %v2898_v43, %v771_v36  ;;  %s2222_s30 = scalar_lea.vmem %s2221_s12, 2048  ;;  %p2223_p10 = scmp.lt.s32.totalorder %s2960_s27, %s2221_s12 }
 0x118   : > { %2068 = vmatmul.mubr.msk.f32.vlgmr.msra.gmra.mxu0 %vm1358_vm1, %v1457_v33  ;;  %v908_v63 = vsel %vm886_vm6, %v905_v55, %v907_v56  ;;  %v906_v7 = vsel %vm886_vm6, %v904_v42, %v905_v55  ;;  %p2224_p8 = scmp.lt.s32.totalorder %s2222_s30, %s2216_s26 }
 0x119   : > { %v984_v44 = vpop.permute.xlu1 %983  ;;  %v912_v8 = vadd.f32 %v908_v63, %v835_v62  ;;  %v911_v10 = vadd.f32 %v906_v7, %v834_v3  ;;  %v923_v31 = vsel %vm886_vm6, %v921_v26, %v922_v34 }
 0x11a   : > { %v982_v46 = vpop.permute.xlu0 %981  ;;  %2073 = vmatmul.mubr.msk.f32.vlgmr.msra.gmra.mxu1 %vm1358_vm1, %v1457_v33  ;;  %v772_v33 = vadd.f32 %v2873_v18, %v2853_v60  ;;  %v928_v51 = vadd.f32 %v923_v31, %v855_v40  ;;  %p2225_p9 = por %p2224_p8, %p2223_p10 }
 0x11b   : > { %v988_v6 = vadd.f32 %v984_v44, %v912_v8  ;;  %v987_v14 = vadd.f32 %v982_v46, %v911_v10 }
 0x11c   : > { %v856_v37 = vadd.f32 %v2892_v39, %v772_v33  ;;  %p2226_p13 = pnand %p2225_p9, %p2219_p1 }
 0x11d   : > { %v1005_v52 = vpop.permute.xlu1 %1004 }
 0x11e   : > { %v1003_v47 = vpop.permute.xlu0 %1002  ;;  %v929_v41 = vadd.f32 %v925_v38, %v856_v37 }
 0x11f   : > { %v1008_v57 = vadd.f32 %v1003_v47, %v928_v51 }
 0x120   : > { %v1009_v44 = vadd.f32 %v1005_v52, %v929_v41 }
 0x121   : > { %v1069_v58 = vpop.permute.xlu1 %1068 }
 0x122   : > { %v1067_v61 = vpop.permute.xlu0 %1066  ;;  %v1073_v15 = vadd.f32 %v1069_v58, %v988_v6  ;;  %v879_v6 = vstv %s1987_s8 }
 0x123   : > { %v1072_v11 = vadd.f32 %v1067_v61, %v987_v14 }
 0x125   : > { %v1090_v0 = vpop.permute.xlu1 %1089 }
 0x126   : > { %v1088_v48 = vpop.permute.xlu0 %1087  ;;  %v1094_v45 = vadd.f32 %v1090_v0, %v1009_v44 }
 0x127   : > { %v1093_v18 = vadd.f32 %v1088_v48, %v1008_v57 }
 0x129   : > { %v1153_v9 = vpop.permute.xlu1 %1152 }
 0x12a   : > { %v1151_v12 = vpop.permute.xlu0 %1150  ;;  %v1157_v19 = vadd.f32 %v1153_v9, %v1073_v15  ;;  %v881_v15 = vmul.f32 %v2823_v2, %v879_v6 }
 0x12b   : > { %v1156_v21 = vadd.f32 %v1151_v12, %v1072_v11 }
 0x12d   : > { %v1175_v13 = vpop.permute.xlu1 %1174 }
 0x12e   : > { %v1173_v17 = vpop.permute.xlu0 %1172  ;;  %v1179_v46 = vadd.f32 %v1175_v13, %v1094_v45 }
 0x12f   : > { %v1178_v16 = vadd.f32 %v1173_v17, %v1093_v18  ;;  %v882_v17 = vmul.f32 %v2827_v25, %v879_v6 }
 0x131   : > { %v1238_v20 = vpop.permute.xlu1 %1237 }
 0x132   : > { %v1242_v24 = vadd.f32 %v1238_v20, %v1157_v19  ;;  %v1236_v4 = vpop.permute.xlu0 %1235  ;;  %v880_v20 = vmul.f32 %v2818_v23, %v879_v6 }
 0x133   : > { %v1241_v27 = vadd.f32 %v1236_v4, %v1156_v21  ;;  %v890_v4 = vrot.slane %v882_v17, 4 }
 0x134   : > { %1310 = vrot.lane.b32.xlu1 %v1242_v24, %s2306_s29  ;;  %v888_v24 = vrot.slane %v881_v15, 4  ;;  %v887_v29 = vrot.slane %v880_v20, 4 }
 0x135   : > { %1308 = vrot.lane.b32.xlu0 %v1241_v27, %s2306_s29  ;;  %v1259_v60 = vpop.permute.xlu1 %1258  ;;  %s368_s29 = sld [smem:[#allocation7]] }
 0x136   : > { %v1257_v49 = vpop.permute.xlu0 %1256  ;;  %v1263_v5 = vadd.f32 %v1259_v60, %v1179_v46  ;;  %v891_v32 = vsel %vm886_vm6, %v888_v24, %v890_v4  ;;  %v889_v35 = vsel %vm886_vm6, %v887_v29, %v888_v24  ;;  %v1768_v24 = vld [vmem:[%s2476_s20 + $0x20] sm:$0xff]  ;;  %v1770_v4 = vld [vmem:[%s2476_s20 + $0x30] sm:$0xff] }
 0x137   : > { %v1262_v50 = vadd.f32 %v1257_v49, %v1178_v16 }
 0x13b   : > { %v369_v56 = vstv %s368_s29 }
 0x13c   : > { %v371_v59 = vmul.f32 %v2823_v2, %v369_v56  ;;  %v370_v61 = vmul.f32 %v2818_v23, %v369_v56 }
 0x15a   : > { %v1321_v22 = vpop.permute.xlu1 %1320 }
 0x15b   : > { %v1325_v39 = vadd.f32 %v1321_v22, %v1263_v5  ;;  %v1319_v53 = vpop.permute.xlu0 %1318 }
 0x15c   : > { %v1324_v54 = vadd.f32 %v1319_v53, %v1262_v50 }
 0x15d   : > { %1330 = vrot.lane.b32.xlu1 %v1325_v39, %s2309_s18 }
 0x15e   : > { %1328 = vrot.lane.b32.xlu0 %v1324_v54, %s2309_s18  ;;  %v401_v43 = vpop.permute.xlu1 %400  ;;  %s2029_s18 = sshll.u32 %s2292_s24, 10 }
 0x15f   : > { %v399_v1 = vpop.permute.xlu0 %398  ;;  %v405_v63 = vadd.f32 %v401_v43, %v371_v59 }
 0x160   : > { %v404_v0 = vadd.f32 %v399_v1, %v370_v61 }
 0x162   : > { %v472_v52 = vpop.permute.xlu1 %471 }
 0x163   : > { %v470_v47 = vpop.permute.xlu0 %469  ;;  %v476_v7 = vadd.f32 %v472_v52, %v405_v63 }
 0x164   : > { %v475_v8 = vadd.f32 %v470_v47, %v404_v0 }
 0x166   : > { %v556_v55 = vpop.permute.xlu1 %555 }
 0x167   : > { %v554_v58 = vpop.permute.xlu0 %553  ;;  %v560_v9 = vadd.f32 %v556_v55, %v476_v7 }
 0x168   : > { %v559_v12 = vadd.f32 %v554_v58, %v475_v8 }
 0x16a   : > { %v641_v42 = vpop.permute.xlu1 %640 }
 0x16b   : > { %v639_v62 = vpop.permute.xlu0 %638  ;;  %v645_v14 = vadd.f32 %v641_v42, %v560_v9  ;;  %v1767_v9 = vld [vmem:[%s2476_s20 + $0x18] sm:$0xff] }
 0x16c   : > { %v644_v11 = vadd.f32 %v639_v62, %v559_v12  ;;  %v1771_v12 = vld [vmem:[%s2476_s20 + $0x38] sm:$0xff] }
 0x16e   : > { %v725_v3 = vpop.permute.xlu1 %724 }
 0x16f   : > { %v723_v48 = vpop.permute.xlu0 %722  ;;  %v729_v21 = vadd.f32 %v725_v3, %v645_v14  ;;  %v1766_v14 = vld [vmem:[%s2476_s20 + $0x10] sm:$0xff] }
 0x170   : > { %v728_v28 = vadd.f32 %v723_v48, %v644_v11  ;;  %v1765_v48 = vld [vmem:[%s2476_s20 + $0x8] sm:$0xff] }
 0x172   : > { %v810_v10 = vpop.permute.xlu1 %809 }
 0x173   : > { %v808_v13 = vpop.permute.xlu0 %807  ;;  %v814_v30 = vadd.f32 %v810_v10, %v729_v21  ;;  %v1769_v10 = vld [vmem:[%s2476_s20 + $0x28] sm:$0xff] }
 0x174   : > { %v813_v34 = vadd.f32 %v808_v13, %v728_v28  ;;  %v1764_v13 = vld [vmem:[%s2476_s20] sm:$0xff]  ;;  %s2958_s20 = scalar_lea.hbm %s3020_s6, %s2029_s18 }
 0x175   : > { %v895_v36 = vadd.f32 %v891_v32, %v814_v30 }
 0x176   : > { %v963_v19 = vpop.permute.xlu1 %962  ;;  %v894_v25 = vadd.f32 %v889_v35, %v813_v34 }
 0x177   : > { %v961_v27 = vpop.permute.xlu0 %960  ;;  %v967_v37 = vadd.f32 %v963_v19, %v895_v36 }
 0x178   : > { %v966_v23 = vadd.f32 %v961_v27, %v894_v25 }
 0x17a   : > { %v1048_v33 = vpop.permute.xlu1 %1047 }
 0x17b   : > { %v1046_v2 = vpop.permute.xlu0 %1045  ;;  %v1052_v40 = vadd.f32 %v1048_v33, %v967_v37 }
 0x17c   : > { %v1051_v41 = vadd.f32 %v1046_v2, %v966_v23 }
 0x17e   : > { %v1132_v26 = vpop.permute.xlu1 %1131 }
 0x17f   : > { %v1130_v38 = vpop.permute.xlu0 %1129  ;;  %v1136_v44 = vadd.f32 %v1132_v26, %v1052_v40 }
 0x180   : > { %v1135_v57 = vadd.f32 %v1130_v38, %v1051_v41 }
 0x182   : > { %v1217_v31 = vpop.permute.xlu1 %1216 }
 0x183   : > { %v1215_v51 = vpop.permute.xlu0 %1214  ;;  %v1221_v60 = vadd.f32 %v1217_v31, %v1136_v44 }
 0x184   : > { %v1220_v46 = vadd.f32 %v1215_v51, %v1135_v57 }
 0x187   : > { %v1301_v45 = vpop.permute.xlu1 %1300 }
 0x188   : > { %v1299_v18 = vpop.permute.xlu0 %1298  ;;  %v1305_v49 = vadd.f32 %v1301_v45, %v1221_v60 }
 0x189   : > { %v1304_v5 = vadd.f32 %v1299_v18, %v1220_v46 }
 0x1a6   : > { %v1311_v16 = vpop.permute.xlu1 %1310 }
 0x1a7   : > { %v1309_v22 = vpop.permute.xlu0 %1308  ;;  %v1315_v50 = vadd.f32 %v1311_v16, %v1305_v49 }
 0x1a8   : > { %v1314_v53 = vadd.f32 %v1309_v22, %v1304_v5 }
 0x1cf   : > { %v1331_v39 = vpop.permute.xlu1 %1330 }
 0x1d0   : > { %v1335_v54 = vadd.f32 %v1331_v39, %v1315_v50  ;;  %v1329_v43 = vpop.permute.xlu0 %1328 }
 0x1d1   : > { %v1334_v52 = vadd.f32 %v1329_v43, %v1314_v53 }
 0x1d2   : > { %v2009_v1 = vmul.f32 -1.442695, %v1335_v54  ;;  %v2059_v42 = vpop.f32.mrf.mxu1 }
 0x1d3   : > { %v2008_v47 = vmul.f32 -1.442695, %v1334_v52 }
 0x1d4   : > { %2162 = vpow2.f32 %v2009_v1  ;;  %v1530_v61 = vpop.f32.mrf.mxu1 }
 0x1d5   : > { %2164 = vpow2.f32 %v2008_v47 }
 0x1d6   : > { %v2064_v7 = vpop.f32.mrf.mxu1 }
 0x1d8   : > { %v1605_v8 = vpop.f32.mrf.mxu1  ;;  %v2069_v11 = vpop.f32.mrf.mxu0 }
 0x1da   : > { %v2074_v20 = vpop.f32.mrf.mxu1  ;;  %v1680_v26 = vpop.f32.mrf.mxu0 }
 0x1dc   : > { %v1755_v37 = vpop.f32.mrf.mxu1 }
 0x1e1   : > { %v2163_v55 = vpop.eup %2162 }
 0x1e2   : > { %v1343_v56 = vadd.f32 1.0, %v2163_v55  ;;  %v2165_v58 = vpop.eup %2164 }
 0x1e3   : > { %v1342_v59 = vadd.f32 1.0, %v2165_v58 }
 0x1e4   : > { %2166 = vrcp.f32 %v1343_v56 }
 0x1e5   : > { %2168 = vrcp.f32 %v1342_v59 }
 0x1f1   : > { %v2167_v62 = vpop.eup %2166 }
 0x1f2   : > { %v1349_v63 = vadd.f32 1.0, %v2167_v62  ;;  %v2169_v0 = vpop.eup %2168 }
 0x1f3   : > { %v1348_v3 = vadd.f32 1.0, %v2169_v0 }
 0x1f4   : > { %1352 = vst.msk [vmem:[#allocation2 + $0x8] sm:$0xff] %vm1350_vm7, %v1349_v63 }
 0x1f5   : > { %1351 = vst.msk [vmem:[#allocation2] sm:$0xff] %vm1350_vm7, %v1348_v3 }
 0x1fb   : > { %v1773_v6 = vld [vmem:[#allocation2 + $0x8] sm:$0xff] }
 0x1fc   : > { %v1775_v15 = vmul.f32 %v1773_v6, %v1765_v48  ;;  %v1777_v17 = vmul.f32 %v1773_v6, %v1767_v9  ;;  %v1779_v19 = vmul.f32 %v1773_v6, %v1769_v10  ;;  %v1781_v21 = vmul.f32 %v1773_v6, %v1771_v12  ;;  %v1772_v27 = vld [vmem:[#allocation2] sm:$0xff] }
 0x1fd   : > { %v1774_v29 = vmul.f32 %v1772_v27, %v1764_v13  ;;  %v1776_v32 = vmul.f32 %v1772_v27, %v1766_v14  ;;  %v1778_v35 = vmul.f32 %v1772_v27, %v1768_v24  ;;  %v1780_v2 = vmul.f32 %v1772_v27, %v1770_v4 }
 0x1fe   : > { %v1783_v28 = vadd.f32 %v2059_v42, %v1775_v15  ;;  %v1785_v30 = vadd.f32 %v2064_v7, %v1777_v17  ;;  %v1787_v33 = vadd.f32 %v2069_v11, %v1779_v19  ;;  %v1789_v34 = vadd.f32 %v2074_v20, %v1781_v21 }
 0x1ff   : > { %v1782_v36 = vadd.f32 %v1774_v29, %v1530_v61  ;;  %v1784_v25 = vadd.f32 %v1776_v32, %v1605_v8  ;;  %v1786_v38 = vadd.f32 %v1778_v35, %v1680_v26  ;;  %v1788_v23 = vadd.f32 %v1780_v2, %v1755_v37 }
 0x200   : > { %1792 = vst.msk [vmem:[%s343_s13 + $0x8] sm:$0xff] %vm1350_vm7, %v1783_v28  ;;  %1794 = vst.msk [vmem:[%s343_s13 + $0x18] sm:$0xff] %vm1350_vm7, %v1785_v30 }
 0x201   : > { %1796 = vst.msk [vmem:[%s343_s13 + $0x28] sm:$0xff] %vm1350_vm7, %v1787_v33  ;;  %1798 = vst.msk [vmem:[%s343_s13 + $0x38] sm:$0xff] %vm1350_vm7, %v1789_v34 }
 0x202   : > { %1791 = vst.msk [vmem:[%s343_s13] sm:$0xff] %vm1350_vm7, %v1782_v36  ;;  %1793 = vst.msk [vmem:[%s343_s13 + $0x10] sm:$0xff] %vm1350_vm7, %v1784_v25 }
 0x203   : > { %1795 = vst.msk [vmem:[%s343_s13 + $0x20] sm:$0xff] %vm1350_vm7, %v1786_v38  ;;  %1797 = vst.msk [vmem:[%s343_s13 + $0x30] sm:$0xff] %vm1350_vm7, %v1788_v23 }
 0x204   : > { %2229 = shalt.err (!%p2226_p13)
}
 0x205   : > { %s2230_s21 = scalar_lea.hbm %s2958_s20, 1024  ;;  %s2234_s3 = scalar_lea.hbm %s3020_s6, 2048 }
 0x206   : > { %p2231_p4 = scmp.ne.s32.totalorder %s2958_s20, %s2230_s21  ;;  %p2235_p5 = scmp.lt.s32.totalorder %s2958_s20, %s3020_s6 }
 0x207   : > { %p2236_p0 = scmp.lt.s32.totalorder %s2234_s3, %s2230_s21 }
 0x208   : > { %p2232_p6 = pnand %p2231_p4, %p3041_p7 }
 0x209   : > { %p2237_p12 = por %p2236_p0, %p2235_p5 }
 0x20a   : > { %p2233_p11 = pneg %p2232_p6 }
 0x20c   : > { %p2238_p3 = pnand %p2237_p12, %p2233_p11 }
 0x20e   : > { %2241 = shalt.err (!%p2238_p3)
}
 0x20f   : > { %s2316_s8 = smov 128   ;;  %s2317_s18 = smov 8  }
 0x210   : > { %2082 = dma.vmem_to_hbm [thread:$0]  (%p3041_p7), %s2960_s27, 1024, %s2958_s20, %s1800_s16, %s2316_s8, %s2316_s8, %s2317_s18  }
 0x211 PF: > { %s3042_s13 = sld [smem:[#allocation12_spill]] }
 0x212   : > { %s3043_s24 = sld [smem:[#allocation14_spill]] }
 0x213   : > { %s3044_s11 = sld [smem:[#allocation13_spill]] }
 0x217   : > { %s1831_s26 = sand.u32 1, %s3042_s13  }
 0x218   : > { %p3045_p2 = scmp.ne.s32.totalorder %s3043_s24, 0  ;;  %s1832_s7 = scalar_lea.sflag [#allocation5], %s1831_s26 }
 0x219   : > { %p3046_p1 = scmp.ge.s32.totalorder %s3044_s11, 2 }
 0x21b   : > { %p2093_p10 = pnand %p3046_p1, %p3045_p2 }
 0x21d   : > { %p2094_p8 = pneg %p2093_p10 }
 0x21f   : > { %2275 = dma.done.wait (%p2094_p8), %s1832_s7, 1024  }
 0x220   : > { %2277 = vsyncadd (%p2094_p8), %s1832_s7, 4294966272  ;;  %s23_s26 = sadd.s32 1, %s3044_s11   ;;  %s3047_s21 = smov %s2284_s22 }
 0x221   : > { %p20_p9 = scmp.ge.s32.totalorder %s23_s26, 4   ;;  %s3048_s22 = smov %s2288_s23 }
 0x222   : > { %s3049_s23 = smov %s2461_s10  ;;  %s3050_s24 = smov %s2296_s25 }
 0x223   : > { %s3051_s25 = smov %s3053_s17  ;;  %22 = sbr.rel (!%p20_p9) target bundleno = 9 (0x9), region = 104 }
 0x228   :  { %1837 = vsyncpa [#allocation4], 1 }
 0x229   :  { %1839 = vsyncpa [#allocation4 + $0x1], 1 }
 0x22a   :  { %1840 = vsyncpa [#allocation5], 1 }
 0x22b   :  { %1842 = vsyncpa [#allocation5 + $0x1], 1 }
 0x22c   :  { %1843 = vsyncpa [#allocation6], 1 }
 0x22d   :  { %1845 = vsyncpa [#allocation6 + $0x1], 1 }

</bundles_post_ra>
